<compile_context>
chip_gen: v5e
topology: v5e:2x2
jax: 0.10.0
libtpu: 0.0.40
codegen_flags: <defaults>
</compile_context>

<pallas_src>
import functools

import jax
import jax.numpy as jnp
from jax.experimental import pallas as pl
from jax.experimental.pallas import tpu as pltpu


def _round_up(v, m):
    return (v + m - 1) // m * m


# ----------------------------------------------------------------------------
# Pallas kernel: pairwise distance mask + distance edge attributes (one tile)
# ----------------------------------------------------------------------------
def _dist_mask_edge_kernel(thr2, x_ref, yt_ref, mask_ref, edge_ref):
    """One (batch, row-tile, col-tile) grid step.

    x_ref:    (1, tn, 2)     row positions        (+inf rows  = padding)
    yt_ref:   (1, 2, tm)     col positions, channel-major (+inf cols = padding)
    mask_ref: (1, tn, tm)    int8 -> 1 where ||x_n - y_m||^2 <= thr2 and both valid
    edge_ref: (1, 2, tn, tm) edge[c] = y_zeroed[m, c] - x_zeroed[n, c]
    """
    inf = jnp.float32(jnp.inf)

    x = x_ref[0]                      # (tn, 2)
    yt = yt_ref[0]                    # (2, tm)

    x0 = x[:, 0:1]                    # (tn, 1)
    x1 = x[:, 1:2]                    # (tn, 1)
    y0 = yt[0:1, :]                   # (1, tm)
    y1 = yt[1:2, :]                   # (1, tm)

    # finiteness check (matches isfinite: +inf, -inf and NaN all invalid)
    x0f = jnp.abs(x0) < inf
    x1f = jnp.abs(x1) < inf
    y0f = jnp.abs(y0) < inf
    y1f = jnp.abs(y1) < inf

    xv = x0f & x1f                    # (tn, 1)
    yv = y0f & y1f                    # (1, tm)

    # torch replaces inf with 0 before computing the difference edge attrs
    x0z = jnp.where(x0f, x0, 0.0)
    x1z = jnp.where(x1f, x1, 0.0)
    y0z = jnp.where(y0f, y0, 0.0)
    y1z = jnp.where(y1f, y1, 0.0)

    dx = y0z - x0z                    # (tn, tm)
    dy = y1z - x1z                    # (tn, tm)

    # squared-distance compare: identical result to sqrt(d2) <= thr, no sqrt
    d2 = dx * dx + dy * dy
    m = (d2 <= thr2) & xv & yv

    mask_ref[0] = m.astype(jnp.int8)
    edge_ref[0, 0] = dx.astype(edge_ref.dtype)
    edge_ref[0, 1] = dy.astype(edge_ref.dtype)


# ----------------------------------------------------------------------------
# Wrapper: tiled pallas_call over (batch, row tiles, col tiles)
# ----------------------------------------------------------------------------
def pairwise_mask_edge(x, y, *, threshold, tile_n=512, tile_m=1024,
                       edge_dtype=jnp.float32, trim=False):
    """mask[b,n,m] = ||x[b,n]-y[b,m]||_2 <= threshold (0 for padded points), int8
       edge[b,c,n,m] = y_zeroed[b,m,c] - x_zeroed[b,n,c]   (channel-major)

    Outputs are padded: rows to a multiple of 32 (<= tile_n), cols to a
    multiple of 128 (<= tile_m).  Padded entries have mask == 0; edge values
    there must be gated by the mask downstream.  Set trim=True to get exact
    torch shapes at the cost of a full extra HBM copy (write-bound kernel).
    """
    B, N, _ = x.shape
    _, M, _ = y.shape

    # Row tile multiple of 32 (int8 mask native tile (32,128)); lane-dense cols.
    tn = min(tile_n, _round_up(N, 32))
    tm = min(tile_m, _round_up(M, 128))
    Np = _round_up(N, tn)
    Mp = _round_up(M, tm)

    # Pad positions with +inf so padded rows/cols come out masked-off.
    if Np != N:
        x = jnp.pad(x, ((0, 0), (0, Np - N), (0, 0)), constant_values=jnp.inf)
    if Mp != M:
        y = jnp.pad(y, ((0, 0), (0, Mp - M), (0, 0)), constant_values=jnp.inf)
    yt = jnp.transpose(y, (0, 2, 1))                       # (B, 2, Mp) -- tiny

    kernel = functools.partial(_dist_mask_edge_kernel,
                               float(threshold) * float(threshold))

    grid = (B, Np // tn, Mp // tm)
    mask, edge = pl.pallas_call(
        kernel,
        out_shape=(
            jax.ShapeDtypeStruct((B, Np, Mp), jnp.int8),
            jax.ShapeDtypeStruct((B, 2, Np, Mp), edge_dtype),
        ),
        grid=grid,
        in_specs=[
            pl.BlockSpec((1, tn, 2), lambda b, i, j: (b, i, 0)),
            pl.BlockSpec((1, 2, tm), lambda b, i, j: (b, 0, j)),
        ],
        out_specs=(
            pl.BlockSpec((1, tn, tm), lambda b, i, j: (b, i, j)),
            pl.BlockSpec((1, 2, tn, tm), lambda b, i, j: (b, 0, i, j)),
        ),
        compiler_params=pltpu.CompilerParams(
            dimension_semantics=("parallel", "parallel", "parallel")),
    )(x, yt)

    if trim and (Np != N or Mp != M):
        # Full extra HBM pass -- only use when exact torch shapes are required.
        mask = mask[:, :N, :M]
        edge = edge[:, :, :N, :M]
    return mask, edge


# ----------------------------------------------------------------------------
# get_adj_mask1 / get_dist_edge_attr equivalents (glue around the kernel)
# ----------------------------------------------------------------------------
@functools.partial(jax.jit, static_argnames=("edge_dtype",))
def get_adj_mask1_pallas(lane_position, agent_position, edge_dtype=jnp.float32):
    """lane_position: (B, L, 2), agent_position: (B, A, 2); +inf = padding.

    Returns (padded outputs; padded rows/cols are masked off):
      masks: list of int8 arrays shaped (B, Np, 1, 1, Mp) (nonzero == True)
      dists: list of arrays shaped (B, 2, Np, Mp) (channel-major layout;
             torch's (B, N, M, 2) == transpose of the trimmed tensor)
    """
    # TODO(synk): the four launches could fuse into one kernel over the
    # concatenated (lane ++ agent) point set, but only if the (undefined)
    # Attention_Block_Edge consumer can take the four sub-blocks as views.
    AL_mask, AL_dist = pairwise_mask_edge(lane_position, agent_position,
                                          threshold=10.0, edge_dtype=edge_dtype)
    LL_mask, LL_dist = pairwise_mask_edge(lane_position, lane_position,
                                          threshold=50.0, edge_dtype=edge_dtype)
    LA_mask, LA_dist = pairwise_mask_edge(agent_position, lane_position,
                                          threshold=10.0, edge_dtype=edge_dtype)
    AA_mask, AA_dist = pairwise_mask_edge(agent_position, agent_position,
                                          threshold=100.0, edge_dtype=edge_dtype)
    # torch: mask.unsqueeze(2).unsqueeze(3) -> (B, N, 1, 1, M); pure metadata.
    masks = [m[:, :, None, None, :] for m in (AL_mask, LL_mask, LA_mask, AA_mask)]
    dists = [AL_dist, LL_dist, LA_dist, AA_dist]
    return masks, dists


# ----------------------------------------------------------------------------
# Model wrapper (only the defined portion of the forward pass)
# ----------------------------------------------------------------------------
class Model:
    def __init__(self, hidden_size, heads, layer, num_historical_steps,
                 num_future_steps, edge_dtype=jnp.float32):
        self.hidden_size = hidden_size
        self.heads = heads
        self.layer = layer
        self.num_historical_steps = num_historical_steps
        self.num_future_steps = num_future_steps
        # Switch to jnp.bfloat16 to nearly halve HBM write traffic (write-bound
        # kernel) if the downstream attention block tolerates reduced precision.
        self.edge_dtype = edge_dtype
        # TODO(synk): PredNet / MapEncoder / ST / Attention_Block_Edge are not
        # defined in the reference source, so their parameters cannot be
        # initialized or their compute replicated here.

    def forward(self, data):
        # TODO(synk): actor_gather / get_dist / ST / MapEncoder / PredNet /
        # inverse are undefined upstream; only the FusionNet adjacency
        # preprocessing (the defined hot path) is computed, via Pallas.
        masks, dists = get_adj_mask1_pallas(data["lane_position"], data["ctrs"],
                                            edge_dtype=self.edge_dtype)
        return masks, dists


# ----------------------------------------------------------------------------
# Pure-JAX reference for correctness checking
# ----------------------------------------------------------------------------
def _ref_mask_edge(x, y, thr):
    vx = jnp.all(jnp.isfinite(x), axis=-1)
    vy = jnp.all(jnp.isfinite(y), axis=-1)
    xz = jnp.where(jnp.isfinite(x), x, 0.0)
    yz = jnp.where(jnp.isfinite(y), y, 0.0)
    diff = yz[:, None, :, :] - xz[:, :, None, :]
    dist = jnp.sqrt(jnp.sum(diff * diff, axis=-1))
    mask = (dist <= thr) & vx[:, :, None] & vy[:, None, :]
    return mask, diff


if __name__ == "__main__":
    key = jax.random.PRNGKey(0)
    B, L, A = 2, 19, 7                     # batch, lanes, agents (non-aligned on purpose)
    k1, k2 = jax.random.split(key)
    lane = jax.random.uniform(k1, (B, L, 2), jnp.float32, -60.0, 60.0)
    agent = jax.random.uniform(k2, (B, A, 2), jnp.float32, -60.0, 60.0)
    # emulate pad_sequence(padding_value=inf): ragged second batch element
    lane = lane.at[1, 15:, :].set(jnp.inf)
    agent = agent.at[1, 5:, :].set(jnp.inf)

    model = Model(hidden_size=32, heads=4, layer=1,
                  num_historical_steps=8, num_future_steps=8)
    data = {"lane_position": lane, "ctrs": agent}

    masks, dists = model.forward(data)
    jax.block_until_ready(masks)
    jax.block_until_ready(dists)

    # verify against pure-JAX reference (slices below are test-only; the
    # production path keeps the padded, masked-off outputs to avoid the copy)
    pairs = [(lane, agent, 10.0), (lane, lane, 50.0),
             (agent, lane, 10.0), (agent, agent, 100.0)]
    for (xx, yy, thr), m, d in zip(pairs, masks, dists):
        n, mm = xx.shape[1], yy.shape[1]
        rm, rd = _ref_mask_edge(xx, yy, thr)
        assert bool(jnp.all((m[:, :n, 0, 0, :mm] != 0) == rm)), "mask mismatch"
        # padded rows/cols must be masked off
        assert bool(jnp.all(m[:, n:, 0, 0, :] == 0)), "pad rows not masked"
        assert bool(jnp.all(m[:, :, 0, 0, mm:] == 0)), "pad cols not masked"
        # kernel edge layout is channel-major (B, 2, Np, Mp); ref is (B, N, M, 2)
        assert bool(jnp.allclose(d[:, 0, :n, :mm], rd[..., 0], atol=1e-5)), "edge dx mismatch"
        assert bool(jnp.allclose(d[:, 1, :n, :mm], rd[..., 1], atol=1e-5)), "edge dy mismatch"

    print("KERNEL_OK")
</pallas_src>

<mosaic_0001>
module attributes {stable_mosaic.version = 11 : i64} {
  func.func @_dist_mask_edge_kernel(%arg0: i32, %arg1: i32, %arg2: i32, %arg3: memref<1x32x2xf32, #tpu.memory_space<vmem>>, %arg4: memref<1x2x128xf32, #tpu.memory_space<vmem>>, %arg5: memref<1x32x128xi8, #tpu.memory_space<vmem>>, %arg6: memref<1x2x32x128xf32, #tpu.memory_space<vmem>>) attributes {dimension_semantics = [#tpu.dimension_semantics<parallel>, #tpu.dimension_semantics<parallel>, #tpu.dimension_semantics<parallel>], iteration_bounds = array<i64: 2, 1, 1>, scalar_prefetch = 0 : i64, scratch_operands = 0 : i64, tpu.core_type = #tpu.core_type<tc>, window_params = [{transform_indices = @transform_0, window_bounds = array<i64: 1, 32, 2>}, {transform_indices = @transform_1, window_bounds = array<i64: 1, 2, 128>}, {transform_indices = @transform_2, window_bounds = array<i64: 1, 32, 128>}, {transform_indices = @transform_3, window_bounds = array<i64: 1, 2, 32, 128>}]} {
    %c0 = arith.constant 0 : index
    %c0_0 = arith.constant 0 : index
    %c0_1 = arith.constant 0 : index
    %0 = vector.load %arg3[%c0, %c0_0, %c0_1] : memref<1x32x2xf32, #tpu.memory_space<vmem>>, vector<1x32x2xf32>
    %1 = vector.shape_cast %0 : vector<1x32x2xf32> to vector<32x2xf32>
    %c0_2 = arith.constant 0 : index
    %c0_3 = arith.constant 0 : index
    %c0_4 = arith.constant 0 : index
    %2 = vector.load %arg4[%c0_2, %c0_3, %c0_4] : memref<1x2x128xf32, #tpu.memory_space<vmem>>, vector<1x2x128xf32>
    %3 = vector.shape_cast %2 : vector<1x2x128xf32> to vector<2x128xf32>
    %4 = vector.extract_strided_slice %1 {offsets = [0, 0], sizes = [32, 1], strides = [1, 1]} : vector<32x2xf32> to vector<32x1xf32>
    %5 = vector.extract_strided_slice %1 {offsets = [0, 1], sizes = [32, 1], strides = [1, 1]} : vector<32x2xf32> to vector<32x1xf32>
    %6 = vector.extract_strided_slice %3 {offsets = [0, 0], sizes = [1, 128], strides = [1, 1]} : vector<2x128xf32> to vector<1x128xf32>
    %7 = vector.extract_strided_slice %3 {offsets = [1, 0], sizes = [1, 128], strides = [1, 1]} : vector<2x128xf32> to vector<1x128xf32>
    %8 = math.absf %4 : vector<32x1xf32>
    %cst = arith.constant 0x7F800000 : f32
    %9 = vector.broadcast %cst : f32 to vector<32x1xf32>
    %10 = arith.cmpf olt, %8, %9 : vector<32x1xf32>
    %11 = math.absf %5 : vector<32x1xf32>
    %cst_5 = arith.constant 0x7F800000 : f32
    %12 = vector.broadcast %cst_5 : f32 to vector<32x1xf32>
    %13 = arith.cmpf olt, %11, %12 : vector<32x1xf32>
    %14 = math.absf %6 : vector<1x128xf32>
    %cst_6 = arith.constant 0x7F800000 : f32
    %15 = vector.broadcast %cst_6 : f32 to vector<1x128xf32>
    %16 = arith.cmpf olt, %14, %15 : vector<1x128xf32>
    %17 = math.absf %7 : vector<1x128xf32>
    %cst_7 = arith.constant 0x7F800000 : f32
    %18 = vector.broadcast %cst_7 : f32 to vector<1x128xf32>
    %19 = arith.cmpf olt, %17, %18 : vector<1x128xf32>
    %20 = arith.andi %10, %13 : vector<32x1xi1>
    %21 = arith.andi %16, %19 : vector<1x128xi1>
    %cst_8 = arith.constant 0.000000e+00 : f32
    %22 = vector.broadcast %cst_8 : f32 to vector<32x1xf32>
    %23 = arith.select %10, %4, %22 : vector<32x1xi1>, vector<32x1xf32>
    %cst_9 = arith.constant 0.000000e+00 : f32
    %24 = vector.broadcast %cst_9 : f32 to vector<32x1xf32>
    %25 = arith.select %13, %5, %24 : vector<32x1xi1>, vector<32x1xf32>
    %cst_10 = arith.constant 0.000000e+00 : f32
    %26 = vector.broadcast %cst_10 : f32 to vector<1x128xf32>
    %27 = arith.select %16, %6, %26 : vector<1x128xi1>, vector<1x128xf32>
    %cst_11 = arith.constant 0.000000e+00 : f32
    %28 = vector.broadcast %cst_11 : f32 to vector<1x128xf32>
    %29 = arith.select %19, %7, %28 : vector<1x128xi1>, vector<1x128xf32>
    %30 = vector.broadcast %27 : vector<1x128xf32> to vector<32x128xf32>
    %31 = vector.broadcast %23 : vector<32x1xf32> to vector<32x128xf32>
    %32 = arith.subf %30, %31 : vector<32x128xf32>
    %33 = vector.broadcast %29 : vector<1x128xf32> to vector<32x128xf32>
    %34 = vector.broadcast %25 : vector<32x1xf32> to vector<32x128xf32>
    %35 = arith.subf %33, %34 : vector<32x128xf32>
    %36 = arith.mulf %32, %32 : vector<32x128xf32>
    %37 = arith.mulf %35, %35 : vector<32x128xf32>
    %38 = arith.addf %36, %37 : vector<32x128xf32>
    %cst_12 = arith.constant 2.500000e+03 : f32
    %39 = vector.broadcast %cst_12 : f32 to vector<32x128xf32>
    %40 = arith.cmpf ole, %38, %39 : vector<32x128xf32>
    %41 = vector.broadcast %20 : vector<32x1xi1> to vector<32x128xi1>
    %42 = arith.andi %40, %41 : vector<32x128xi1>
    %43 = vector.broadcast %21 : vector<1x128xi1> to vector<32x128xi1>
    %44 = arith.andi %42, %43 : vector<32x128xi1>
    %45 = arith.extui %44 : vector<32x128xi1> to vector<32x128xi8>
    %c0_13 = arith.constant 0 : index
    %c0_14 = arith.constant 0 : index
    %c0_15 = arith.constant 0 : index
    %46 = vector.load %arg5[%c0_13, %c0_14, %c0_15] : memref<1x32x128xi8, #tpu.memory_space<vmem>>, vector<1x32x128xi8>
    %47 = vector.shape_cast %46 : vector<1x32x128xi8> to vector<32x128xi8>
    %48 = vector.shape_cast %45 : vector<32x128xi8> to vector<1x32x128xi8>
    tpu.vector_store %arg5[%c0_13, %c0_14, %c0_15], %48 {strides = array<i32>} : memref<1x32x128xi8, #tpu.memory_space<vmem>>, vector<1x32x128xi8>,
    %c0_16 = arith.constant 0 : index
    %c0_17 = arith.constant 0 : index
    %c0_18 = arith.constant 0 : index
    %c0_19 = arith.constant 0 : index
    %49 = vector.load %arg6[%c0_16, %c0_17, %c0_18, %c0_19] : memref<1x2x32x128xf32, #tpu.memory_space<vmem>>, vector<1x1x32x128xf32>
    %50 = vector.shape_cast %49 : vector<1x1x32x128xf32> to vector<32x128xf32>
    %51 = vector.shape_cast %32 : vector<32x128xf32> to vector<1x1x32x128xf32>
    tpu.vector_store %arg6[%c0_16, %c0_17, %c0_18, %c0_19], %51 {strides = array<i32>} : memref<1x2x32x128xf32, #tpu.memory_space<vmem>>, vector<1x1x32x128xf32>,
    %c0_20 = arith.constant 0 : index
    %c1 = arith.constant 1 : index
    %c0_21 = arith.constant 0 : index
    %c0_22 = arith.constant 0 : index
    %52 = vector.load %arg6[%c0_20, %c1, %c0_21, %c0_22] : memref<1x2x32x128xf32, #tpu.memory_space<vmem>>, vector<1x1x32x128xf32>
    %53 = vector.shape_cast %52 : vector<1x1x32x128xf32> to vector<32x128xf32>
    %54 = vector.shape_cast %35 : vector<32x128xf32> to vector<1x1x32x128xf32>
    tpu.vector_store %arg6[%c0_20, %c1, %c0_21, %c0_22], %54 {strides = array<i32>} : memref<1x2x32x128xf32, #tpu.memory_space<vmem>>, vector<1x1x32x128xf32>,
    return
  }
  func.func @transform_0(%arg0: i32, %arg1: i32, %arg2: i32) -> (i32, i32, i32) {
    %c0_i32 = arith.constant 0 : i32
    %c0_i32_0 = arith.constant 0 : i32
    return %arg0, %arg1, %c0_i32 : i32, i32, i32
  }
  func.func @transform_1(%arg0: i32, %arg1: i32, %arg2: i32) -> (i32, i32, i32) {
    %c0_i32 = arith.constant 0 : i32
    %c0_i32_0 = arith.constant 0 : i32
    return %arg0, %c0_i32, %arg2 : i32, i32, i32
  }
  func.func @transform_2(%arg0: i32, %arg1: i32, %arg2: i32) -> (i32, i32, i32) {
    %c0_i32 = arith.constant 0 : i32
    return %arg0, %arg1, %arg2 : i32, i32, i32
  }
  func.func @transform_3(%arg0: i32, %arg1: i32, %arg2: i32) -> (i32, i32, i32, i32) {
    %c0_i32 = arith.constant 0 : i32
    %c0_i32_0 = arith.constant 0 : i32
    return %arg0, %c0_i32, %arg1, %arg2 : i32, i32, i32, i32
  }
}

module attributes {stable_mosaic.version = 11 : i64} {
  func.func @_dist_mask_edge_kernel(%arg0: i32, %arg1: i32, %arg2: i32, %arg3: memref<1x32x2xf32, #tpu.memory_space<vmem>>, %arg4: memref<1x2x128xf32, #tpu.memory_space<vmem>>, %arg5: memref<1x32x128xi8, #tpu.memory_space<vmem>>, %arg6: memref<1x2x32x128xf32, #tpu.memory_space<vmem>>) attributes {dimension_semantics = [#tpu.dimension_semantics<parallel>, #tpu.dimension_semantics<parallel>, #tpu.dimension_semantics<parallel>], iteration_bounds = array<i64: 2, 1, 1>, scalar_prefetch = 0 : i64, scratch_operands = 0 : i64, tpu.core_type = #tpu.core_type<tc>, window_params = [{transform_indices = @transform_0, window_bounds = array<i64: 1, 32, 2>}, {transform_indices = @transform_1, window_bounds = array<i64: 1, 2, 128>}, {transform_indices = @transform_2, window_bounds = array<i64: 1, 32, 128>}, {transform_indices = @transform_3, window_bounds = array<i64: 1, 2, 32, 128>}]} {
    %c0 = arith.constant 0 : index
    %c0_0 = arith.constant 0 : index
    %c0_1 = arith.constant 0 : index
    %0 = vector.load %arg3[%c0, %c0_0, %c0_1] : memref<1x32x2xf32, #tpu.memory_space<vmem>>, vector<1x32x2xf32>
    %1 = vector.shape_cast %0 : vector<1x32x2xf32> to vector<32x2xf32>
    %c0_2 = arith.constant 0 : index
    %c0_3 = arith.constant 0 : index
    %c0_4 = arith.constant 0 : index
    %2 = vector.load %arg4[%c0_2, %c0_3, %c0_4] : memref<1x2x128xf32, #tpu.memory_space<vmem>>, vector<1x2x128xf32>
    %3 = vector.shape_cast %2 : vector<1x2x128xf32> to vector<2x128xf32>
    %4 = vector.extract_strided_slice %1 {offsets = [0, 0], sizes = [32, 1], strides = [1, 1]} : vector<32x2xf32> to vector<32x1xf32>
    %5 = vector.extract_strided_slice %1 {offsets = [0, 1], sizes = [32, 1], strides = [1, 1]} : vector<32x2xf32> to vector<32x1xf32>
    %6 = vector.extract_strided_slice %3 {offsets = [0, 0], sizes = [1, 128], strides = [1, 1]} : vector<2x128xf32> to vector<1x128xf32>
    %7 = vector.extract_strided_slice %3 {offsets = [1, 0], sizes = [1, 128], strides = [1, 1]} : vector<2x128xf32> to vector<1x128xf32>
    %8 = math.absf %4 : vector<32x1xf32>
    %cst = arith.constant 0x7F800000 : f32
    %9 = vector.broadcast %cst : f32 to vector<32x1xf32>
    %10 = arith.cmpf olt, %8, %9 : vector<32x1xf32>
    %11 = math.absf %5 : vector<32x1xf32>
    %cst_5 = arith.constant 0x7F800000 : f32
    %12 = vector.broadcast %cst_5 : f32 to vector<32x1xf32>
    %13 = arith.cmpf olt, %11, %12 : vector<32x1xf32>
    %14 = math.absf %6 : vector<1x128xf32>
    %cst_6 = arith.constant 0x7F800000 : f32
    %15 = vector.broadcast %cst_6 : f32 to vector<1x128xf32>
    %16 = arith.cmpf olt, %14, %15 : vector<1x128xf32>
    %17 = math.absf %7 : vector<1x128xf32>
    %cst_7 = arith.constant 0x7F800000 : f32
    %18 = vector.broadcast %cst_7 : f32 to vector<1x128xf32>
    %19 = arith.cmpf olt, %17, %18 : vector<1x128xf32>
    %20 = arith.andi %10, %13 : vector<32x1xi1>
    %21 = arith.andi %16, %19 : vector<1x128xi1>
    %cst_8 = arith.constant 0.000000e+00 : f32
    %22 = vector.broadcast %cst_8 : f32 to vector<32x1xf32>
    %23 = arith.select %10, %4, %22 : vector<32x1xi1>, vector<32x1xf32>
    %cst_9 = arith.constant 0.000000e+00 : f32
    %24 = vector.broadcast %cst_9 : f32 to vector<32x1xf32>
    %25 = arith.select %13, %5, %24 : vector<32x1xi1>, vector<32x1xf32>
    %cst_10 = arith.constant 0.000000e+00 : f32
    %26 = vector.broadcast %cst_10 : f32 to vector<1x128xf32>
    %27 = arith.select %16, %6, %26 : vector<1x128xi1>, vector<1x128xf32>
    %cst_11 = arith.constant 0.000000e+00 : f32
    %28 = vector.broadcast %cst_11 : f32 to vector<1x128xf32>
    %29 = arith.select %19, %7, %28 : vector<1x128xi1>, vector<1x128xf32>
    %30 = vector.broadcast %27 : vector<1x128xf32> to vector<32x128xf32>
    %31 = vector.broadcast %23 : vector<32x1xf32> to vector<32x128xf32>
    %32 = arith.subf %30, %31 : vector<32x128xf32>
    %33 = vector.broadcast %29 : vector<1x128xf32> to vector<32x128xf32>
    %34 = vector.broadcast %25 : vector<32x1xf32> to vector<32x128xf32>
    %35 = arith.subf %33, %34 : vector<32x128xf32>
    %36 = arith.mulf %32, %32 : vector<32x128xf32>
    %37 = arith.mulf %35, %35 : vector<32x128xf32>
    %38 = arith.addf %36, %37 : vector<32x128xf32>
    %cst_12 = arith.constant 1.000000e+02 : f32
    %39 = vector.broadcast %cst_12 : f32 to vector<32x128xf32>
    %40 = arith.cmpf ole, %38, %39 : vector<32x128xf32>
    %41 = vector.broadcast %20 : vector<32x1xi1> to vector<32x128xi1>
    %42 = arith.andi %40, %41 : vector<32x128xi1>
    %43 = vector.broadcast %21 : vector<1x128xi1> to vector<32x128xi1>
    %44 = arith.andi %42, %43 : vector<32x128xi1>
    %45 = arith.extui %44 : vector<32x128xi1> to vector<32x128xi8>
    %c0_13 = arith.constant 0 : index
    %c0_14 = arith.constant 0 : index
    %c0_15 = arith.constant 0 : index
    %46 = vector.load %arg5[%c0_13, %c0_14, %c0_15] : memref<1x32x128xi8, #tpu.memory_space<vmem>>, vector<1x32x128xi8>
    %47 = vector.shape_cast %46 : vector<1x32x128xi8> to vector<32x128xi8>
    %48 = vector.shape_cast %45 : vector<32x128xi8> to vector<1x32x128xi8>
    tpu.vector_store %arg5[%c0_13, %c0_14, %c0_15], %48 {strides = array<i32>} : memref<1x32x128xi8, #tpu.memory_space<vmem>>, vector<1x32x128xi8>,
    %c0_16 = arith.constant 0 : index
    %c0_17 = arith.constant 0 : index
    %c0_18 = arith.constant 0 : index
    %c0_19 = arith.constant 0 : index
    %49 = vector.load %arg6[%c0_16, %c0_17, %c0_18, %c0_19] : memref<1x2x32x128xf32, #tpu.memory_space<vmem>>, vector<1x1x32x128xf32>
    %50 = vector.shape_cast %49 : vector<1x1x32x128xf32> to vector<32x128xf32>
    %51 = vector.shape_cast %32 : vector<32x128xf32> to vector<1x1x32x128xf32>
    tpu.vector_store %arg6[%c0_16, %c0_17, %c0_18, %c0_19], %51 {strides = array<i32>} : memref<1x2x32x128xf32, #tpu.memory_space<vmem>>, vector<1x1x32x128xf32>,
    %c0_20 = arith.constant 0 : index
    %c1 = arith.constant 1 : index
    %c0_21 = arith.constant 0 : index
    %c0_22 = arith.constant 0 : index
    %52 = vector.load %arg6[%c0_20, %c1, %c0_21, %c0_22] : memref<1x2x32x128xf32, #tpu.memory_space<vmem>>, vector<1x1x32x128xf32>
    %53 = vector.shape_cast %52 : vector<1x1x32x128xf32> to vector<32x128xf32>
    %54 = vector.shape_cast %35 : vector<32x128xf32> to vector<1x1x32x128xf32>
    tpu.vector_store %arg6[%c0_20, %c1, %c0_21, %c0_22], %54 {strides = array<i32>} : memref<1x2x32x128xf32, #tpu.memory_space<vmem>>, vector<1x1x32x128xf32>,
    return
  }
  func.func @transform_0(%arg0: i32, %arg1: i32, %arg2: i32) -> (i32, i32, i32) {
    %c0_i32 = arith.constant 0 : i32
    %c0_i32_0 = arith.constant 0 : i32
    return %arg0, %arg1, %c0_i32 : i32, i32, i32
  }
  func.func @transform_1(%arg0: i32, %arg1: i32, %arg2: i32) -> (i32, i32, i32) {
    %c0_i32 = arith.constant 0 : i32
    %c0_i32_0 = arith.constant 0 : i32
    return %arg0, %c0_i32, %arg2 : i32, i32, i32
  }
  func.func @transform_2(%arg0: i32, %arg1: i32, %arg2: i32) -> (i32, i32, i32) {
    %c0_i32 = arith.constant 0 : i32
    return %arg0, %arg1, %arg2 : i32, i32, i32
  }
  func.func @transform_3(%arg0: i32, %arg1: i32, %arg2: i32) -> (i32, i32, i32, i32) {
    %c0_i32 = arith.constant 0 : i32
    %c0_i32_0 = arith.constant 0 : i32
    return %arg0, %c0_i32, %arg1, %arg2 : i32, i32, i32, i32
  }
}

module attributes {stable_mosaic.version = 11 : i64} {
  func.func @_dist_mask_edge_kernel(%arg0: i32, %arg1: i32, %arg2: i32, %arg3: memref<1x32x2xf32, #tpu.memory_space<vmem>>, %arg4: memref<1x2x128xf32, #tpu.memory_space<vmem>>, %arg5: memref<1x32x128xi8, #tpu.memory_space<vmem>>, %arg6: memref<1x2x32x128xf32, #tpu.memory_space<vmem>>) attributes {dimension_semantics = [#tpu.dimension_semantics<parallel>, #tpu.dimension_semantics<parallel>, #tpu.dimension_semantics<parallel>], iteration_bounds = array<i64: 2, 1, 1>, scalar_prefetch = 0 : i64, scratch_operands = 0 : i64, tpu.core_type = #tpu.core_type<tc>, window_params = [{transform_indices = @transform_0, window_bounds = array<i64: 1, 32, 2>}, {transform_indices = @transform_1, window_bounds = array<i64: 1, 2, 128>}, {transform_indices = @transform_2, window_bounds = array<i64: 1, 32, 128>}, {transform_indices = @transform_3, window_bounds = array<i64: 1, 2, 32, 128>}]} {
    %c0 = arith.constant 0 : index
    %c0_0 = arith.constant 0 : index
    %c0_1 = arith.constant 0 : index
    %0 = vector.load %arg3[%c0, %c0_0, %c0_1] : memref<1x32x2xf32, #tpu.memory_space<vmem>>, vector<1x32x2xf32>
    %1 = vector.shape_cast %0 : vector<1x32x2xf32> to vector<32x2xf32>
    %c0_2 = arith.constant 0 : index
    %c0_3 = arith.constant 0 : index
    %c0_4 = arith.constant 0 : index
    %2 = vector.load %arg4[%c0_2, %c0_3, %c0_4] : memref<1x2x128xf32, #tpu.memory_space<vmem>>, vector<1x2x128xf32>
    %3 = vector.shape_cast %2 : vector<1x2x128xf32> to vector<2x128xf32>
    %4 = vector.extract_strided_slice %1 {offsets = [0, 0], sizes = [32, 1], strides = [1, 1]} : vector<32x2xf32> to vector<32x1xf32>
    %5 = vector.extract_strided_slice %1 {offsets = [0, 1], sizes = [32, 1], strides = [1, 1]} : vector<32x2xf32> to vector<32x1xf32>
    %6 = vector.extract_strided_slice %3 {offsets = [0, 0], sizes = [1, 128], strides = [1, 1]} : vector<2x128xf32> to vector<1x128xf32>
    %7 = vector.extract_strided_slice %3 {offsets = [1, 0], sizes = [1, 128], strides = [1, 1]} : vector<2x128xf32> to vector<1x128xf32>
    %8 = math.absf %4 : vector<32x1xf32>
    %cst = arith.constant 0x7F800000 : f32
    %9 = vector.broadcast %cst : f32 to vector<32x1xf32>
    %10 = arith.cmpf olt, %8, %9 : vector<32x1xf32>
    %11 = math.absf %5 : vector<32x1xf32>
    %cst_5 = arith.constant 0x7F800000 : f32
    %12 = vector.broadcast %cst_5 : f32 to vector<32x1xf32>
    %13 = arith.cmpf olt, %11, %12 : vector<32x1xf32>
    %14 = math.absf %6 : vector<1x128xf32>
    %cst_6 = arith.constant 0x7F800000 : f32
    %15 = vector.broadcast %cst_6 : f32 to vector<1x128xf32>
    %16 = arith.cmpf olt, %14, %15 : vector<1x128xf32>
    %17 = math.absf %7 : vector<1x128xf32>
    %cst_7 = arith.constant 0x7F800000 : f32
    %18 = vector.broadcast %cst_7 : f32 to vector<1x128xf32>
    %19 = arith.cmpf olt, %17, %18 : vector<1x128xf32>
    %20 = arith.andi %10, %13 : vector<32x1xi1>
    %21 = arith.andi %16, %19 : vector<1x128xi1>
    %cst_8 = arith.constant 0.000000e+00 : f32
    %22 = vector.broadcast %cst_8 : f32 to vector<32x1xf32>
    %23 = arith.select %10, %4, %22 : vector<32x1xi1>, vector<32x1xf32>
    %cst_9 = arith.constant 0.000000e+00 : f32
    %24 = vector.broadcast %cst_9 : f32 to vector<32x1xf32>
    %25 = arith.select %13, %5, %24 : vector<32x1xi1>, vector<32x1xf32>
    %cst_10 = arith.constant 0.000000e+00 : f32
    %26 = vector.broadcast %cst_10 : f32 to vector<1x128xf32>
    %27 = arith.select %16, %6, %26 : vector<1x128xi1>, vector<1x128xf32>
    %cst_11 = arith.constant 0.000000e+00 : f32
    %28 = vector.broadcast %cst_11 : f32 to vector<1x128xf32>
    %29 = arith.select %19, %7, %28 : vector<1x128xi1>, vector<1x128xf32>
    %30 = vector.broadcast %27 : vector<1x128xf32> to vector<32x128xf32>
    %31 = vector.broadcast %23 : vector<32x1xf32> to vector<32x128xf32>
    %32 = arith.subf %30, %31 : vector<32x128xf32>
    %33 = vector.broadcast %29 : vector<1x128xf32> to vector<32x128xf32>
    %34 = vector.broadcast %25 : vector<32x1xf32> to vector<32x128xf32>
    %35 = arith.subf %33, %34 : vector<32x128xf32>
    %36 = arith.mulf %32, %32 : vector<32x128xf32>
    %37 = arith.mulf %35, %35 : vector<32x128xf32>
    %38 = arith.addf %36, %37 : vector<32x128xf32>
    %cst_12 = arith.constant 1.000000e+04 : f32
    %39 = vector.broadcast %cst_12 : f32 to vector<32x128xf32>
    %40 = arith.cmpf ole, %38, %39 : vector<32x128xf32>
    %41 = vector.broadcast %20 : vector<32x1xi1> to vector<32x128xi1>
    %42 = arith.andi %40, %41 : vector<32x128xi1>
    %43 = vector.broadcast %21 : vector<1x128xi1> to vector<32x128xi1>
    %44 = arith.andi %42, %43 : vector<32x128xi1>
    %45 = arith.extui %44 : vector<32x128xi1> to vector<32x128xi8>
    %c0_13 = arith.constant 0 : index
    %c0_14 = arith.constant 0 : index
    %c0_15 = arith.constant 0 : index
    %46 = vector.load %arg5[%c0_13, %c0_14, %c0_15] : memref<1x32x128xi8, #tpu.memory_space<vmem>>, vector<1x32x128xi8>
    %47 = vector.shape_cast %46 : vector<1x32x128xi8> to vector<32x128xi8>
    %48 = vector.shape_cast %45 : vector<32x128xi8> to vector<1x32x128xi8>
    tpu.vector_store %arg5[%c0_13, %c0_14, %c0_15], %48 {strides = array<i32>} : memref<1x32x128xi8, #tpu.memory_space<vmem>>, vector<1x32x128xi8>,
    %c0_16 = arith.constant 0 : index
    %c0_17 = arith.constant 0 : index
    %c0_18 = arith.constant 0 : index
    %c0_19 = arith.constant 0 : index
    %49 = vector.load %arg6[%c0_16, %c0_17, %c0_18, %c0_19] : memref<1x2x32x128xf32, #tpu.memory_space<vmem>>, vector<1x1x32x128xf32>
    %50 = vector.shape_cast %49 : vector<1x1x32x128xf32> to vector<32x128xf32>
    %51 = vector.shape_cast %32 : vector<32x128xf32> to vector<1x1x32x128xf32>
    tpu.vector_store %arg6[%c0_16, %c0_17, %c0_18, %c0_19], %51 {strides = array<i32>} : memref<1x2x32x128xf32, #tpu.memory_space<vmem>>, vector<1x1x32x128xf32>,
    %c0_20 = arith.constant 0 : index
    %c1 = arith.constant 1 : index
    %c0_21 = arith.constant 0 : index
    %c0_22 = arith.constant 0 : index
    %52 = vector.load %arg6[%c0_20, %c1, %c0_21, %c0_22] : memref<1x2x32x128xf32, #tpu.memory_space<vmem>>, vector<1x1x32x128xf32>
    %53 = vector.shape_cast %52 : vector<1x1x32x128xf32> to vector<32x128xf32>
    %54 = vector.shape_cast %35 : vector<32x128xf32> to vector<1x1x32x128xf32>
    tpu.vector_store %arg6[%c0_20, %c1, %c0_21, %c0_22], %54 {strides = array<i32>} : memref<1x2x32x128xf32, #tpu.memory_space<vmem>>, vector<1x1x32x128xf32>,
    return
  }
  func.func @transform_0(%arg0: i32, %arg1: i32, %arg2: i32) -> (i32, i32, i32) {
    %c0_i32 = arith.constant 0 : i32
    %c0_i32_0 = arith.constant 0 : i32
    return %arg0, %arg1, %c0_i32 : i32, i32, i32
  }
  func.func @transform_1(%arg0: i32, %arg1: i32, %arg2: i32) -> (i32, i32, i32) {
    %c0_i32 = arith.constant 0 : i32
    %c0_i32_0 = arith.constant 0 : i32
    return %arg0, %c0_i32, %arg2 : i32, i32, i32
  }
  func.func @transform_2(%arg0: i32, %arg1: i32, %arg2: i32) -> (i32, i32, i32) {
    %c0_i32 = arith.constant 0 : i32
    return %arg0, %arg1, %arg2 : i32, i32, i32
  }
  func.func @transform_3(%arg0: i32, %arg1: i32, %arg2: i32) -> (i32, i32, i32, i32) {
    %c0_i32 = arith.constant 0 : i32
    %c0_i32_0 = arith.constant 0 : i32
    return %arg0, %c0_i32, %arg1, %arg2 : i32, i32, i32, i32
  }
}

</mosaic_0001>

<bundles_post_ra>
// kernel: get_adj_mask1_pallas.4
= control target key start
LH: loop header
LB: loop body
LE: loop exit
PB: predicated region body
PF: predicated region fallthrough
CT: control target
= control target key end

     0   :  { %9 = vsyncpa [#allocation3], 0  ;;  %s1047_s0 = inlined_call_operand.vmem [shape: f32[2,32,2], index: 0, kind: input, shape index: {}]   ;;  %s1048_s1 = inlined_call_operand.vmem [shape: f32[2,2,128], index: 1, kind: input, shape index: {}]   ;;  %s1049_s2 = inlined_call_operand.hbm [shape: s8[2,32,128], index: 2, kind: output, shape index: {0}]   ;;  %s1050_s3 = inlined_call_operand.hbm [shape: f32[2,2,32,128], index: 3, kind: output, shape index: {1}]  }
   0x1   :  { %11 = vsyncpa [#allocation3 + $0x1], 0 }
   0x2   :  { %12 = vsyncpa [#allocation5], 0 }
   0x3   :  { %14 = vsyncpa [#allocation5 + $0x1], 0  ;;  %s815_s12 = smov 0   ;;  %s817_s13 = smov 0  }
   0x4   :  { %s819_s14 = smov 0   ;;  %s821_s15 = smov 0  }
   0x5   :  { %s823_s16 = smov 0   ;;  %s825_s17 = smov 0  }
   0x6 LB: > { %s581_s18 = sadd.s32 4294967295, %s788_s17   ;;  %s582_s19 = sadd.s32 4294967294, %s788_s17   ;;  %s788_s17 = sphi %s825_s17, %s20_s17   ;;  %s784_s16 = sphi %s823_s16, %s1071_s16   ;;  %s780_s15 = sphi %s821_s15, %s1070_s15   ;;  %s776_s14 = sphi %s819_s14, %s1069_s14   ;;  %s772_s13 = sphi %s817_s13, %s1068_s13   ;;  %s768_s12 = sphi %s815_s12, %s1067_s12  }
   0x7   : > { %s39_s20 = sadd.s32 1, %s784_s16  ;;  %s106_s21 = sadd.s32 1, %s776_s14 }
   0x8   : > { %p41_p0 = scmp.ge.s32.totalorder %s39_s20, 2  ;;  %p116_p1 = scmp.ne.s32.totalorder %s776_s14, %s772_s13 }
   0x9   : > { %p117_p2 = scmp.eq.s32.totalorder %s581_s18, 1  ;;  %p122_p3 = scmp.ne.s32.totalorder %s772_s13, %s768_s12 }
   0xa   : > { %s1073_s20 = smov (%p41_p0, %s39_s20), 0  ;;  %p123_p5 = scmp.eq.s32.totalorder %s582_s19, 1 }
   0xb   : > { %p855_p4 = por %p117_p2, %p116_p1  ;;  %s99_s23 = ssub.s32 %s784_s16, %s1073_s20 }
   0xc   : > { %p585_p6 = scmp.ge.s32.totalorder %s788_s17, 1  ;;  %p104_p7 = scmp.eq.s32.totalorder %s99_s23, 0 }
   0xd   : > { %p862_p8 = por %p123_p5, %p122_p3  ;;  %p194_p9 = scmp.lt.s32.totalorder %s788_s17, 3 }
   0xe   : > { %s868_s25 = scalar_select %p104_p7, %s776_s14, %s106_s21  }
   0xf   : > { %p195_p10 = pnand %p585_p6, %p194_p9 }
  0x10   : > { %p235_p11 = scmp.lt.s32.totalorder (!%p195_p10), %s780_s15, 1  ;;  %s791_s4 = smov (!%p195_p10), 127  }
  0x11   : > { %198 = sbr.rel (%p195_p10) target bundleno = 284 (0x11c), region = 28  ;;  %s925_s9 = sand.u32 (!%p195_p10), 1, %s772_s13  }
  0x12   : > { %s587_s10 = sshll.u32 (!%p195_p10), %s925_s9, 6  ;;  %s603_s18 = sshll.u32 (!%p195_p10), %s780_s15, 6 }
  0x13   : > { %s936_s11 = scalar_lea.vmem (!%p195_p10), [#allocation4], %s587_s10  ;;  %s444_s23 = scalar_lea.hbm (!%p195_p10), %s1050_s3, %s603_s18 }
  0x14   : > { %s414_s28 = scalar_lea.sflag (!%p195_p10), [#allocation5], %s925_s9  ;;  %s698_s6 = scalar_lea.hbm (!%p195_p10), %s1050_s3, 128 }
  0x16   : > { %v790_v0 = vmov 0   ;;  %s874_s26 = scalar_select %p235_p11, %s780_s15, 1  ;;  %v792_v21 = vmov 1  }
  0x17   : > { %671 = vset.pattern.permute.xlu1 %v790_v0  ;;  %670 = vset.pattern.permute.xlu0 %v790_v0 }
  0x18   : > { %669 = vset.pattern.permute.xlu2 %v790_v0  ;;  %s602_s27 = sshll.u32 %s874_s26, 5  ;;  %s590_s5 = sshll.u32 %s874_s26, 1 }
  0x19   : > { %s242_s30 = scalar_lea.vmem %s1047_s0, %s602_s27  ;;  %s250_s8 = scalar_lea.vmem %s1048_s1, %s590_s5 }
  0x1a   : > { %v254_v1 = vld [vmem:[%s242_s30] sm:$0xff]  ;;  %v256_v2 = vld [vmem:[%s242_s30 + $0x10] sm:$0xff]  ;;  %v255_v3 = vld [vmem:[%s242_s30 + $0x8] sm:$0xff]  ;;  %s445_s26 = sshll.u32 %s936_s11, 4  ;;  %s447_s27 = sshll.u32 %s444_s23, 4  ;;  %s446_s26 = int_to_ptr.vmem [resolvable:$true] %s445_s26  ;;  %s448_s27 = int_to_ptr.hbm [resolvable:$true] %s447_s27 }
  0x1b   : > { %v259_v4 = vand.u32 2147483647, %v254_v1  ;;  %v261_v5 = vand.u32 2147483647, %v256_v2  ;;  %v257_v6 = vld [vmem:[%s242_s30 + $0x18] sm:$0xff]  ;;  %s692_s29 = sshra.s32 %s448_s27, 4  ;;  %s693_s29 = int_to_ptr.hbm [resolvable:$true] %s692_s29 }
  0x1c   : > { %v260_v9 = vand.u32 2147483647, %v255_v3  ;;  %v262_v10 = vand.u32 2147483647, %v257_v6  ;;  %v258_v22 = vld [vmem:[%s250_s8] sm:$0x3]  ;;  %p699_p1 = scmp.lt.s32.totalorder %s693_s29, %s1050_s3 }
  0x1d   : > { %vm881_vm0 = vcmp.lt.f32.partialorder %v259_v4, inf  ;;  %vm885_vm1 = vcmp.lt.f32.partialorder %v261_v5, inf  ;;  %v267_v24 = vand.u32 2147483647, %v258_v22  ;;  %s694_s30 = scalar_lea.hbm %s693_s29, 64 }
  0x1e   : > { %v269_v11 = vsel %vm881_vm0, 1, %v790_v0  ;;  %v271_v12 = vsel %vm885_vm1, 1, %v790_v0  ;;  %v293_v13 = vsel %vm881_vm0, %v254_v1, 0.0  ;;  %vm897_vm2 = vcmp.lt.f32.partialorder %v260_v9, inf  ;;  %p695_p12 = scmp.ne.s32.totalorder %s693_s29, %s694_s30  ;;  %p700_p2 = scmp.lt.s32.totalorder %s698_s6, %s694_s30 }
  0x1f   : > { %273 = vrot.lane.b32.xlu0 %v269_v11, %s791_s4  ;;  %277 = vrot.lane.b32.xlu1 %v271_v12, %s791_s4  ;;  %vm901_vm3 = vcmp.lt.f32.partialorder %v262_v10, inf  ;;  %v270_v16 = vsel %vm897_vm2, 1, %v790_v0  ;;  %v294_v18 = vsel %vm897_vm2, %v255_v3, 0.0  ;;  %v295_v20 = vsel %vm885_vm1, %v256_v2, 0.0 }
  0x20   : > { %301 = vperm.xlu2 %669, %v293_v13   ;;  %v272_v17 = vsel %vm901_vm3, 1, %v790_v0  ;;  %v296_v19 = vsel %vm901_vm3, %v257_v6, 0.0  ;;  %vm927_vm4 = vcmp.lt.f32.partialorder %v267_v24, inf  ;;  %p696_p13 = pnand %p695_p12, %p855_p4  ;;  %p701_p3 = por %p700_p2, %p699_p1 }
  0x21   : > { %v297_v26 = vsel %vm927_vm4, %v258_v22, 0.0 }
  0x22   : > { %v298_v27 = vperm.slane %v297_v26, 0  ;;  %v323_v33 = vperm.slane %v297_v26, 1  ;;  %p697_p0 = pneg %p696_p13 }
  0x24   : > { %p702_p5 = pnand %p701_p3, %p697_p0 }
  0x27   : > { %275 = vrot.lane.b32.xlu0 %v270_v16, %s791_s4  ;;  %279 = vrot.lane.b32.xlu1 %v272_v17, %s791_s4 }
  0x28   : > { %306 = vperm.xlu2 %669, %v294_v18  }
  0x2f   : > { %316 = vperm.xlu1 %671, %v296_v19   ;;  %311 = vperm.xlu0 %670, %v295_v20  }
  0x30   : > { %672 = vset.pattern.permute.xlu2 %v792_v21 }
  0x31   : > { %325 = vperm.xlu2 %672, %v293_v13  }
  0x37   : > { %673 = vset.pattern.permute.xlu1 %v792_v21  ;;  %674 = vset.pattern.permute.xlu0 %v792_v21 }
  0x38   : > { %329 = vperm.xlu1 %673, %v294_v18   ;;  %337 = vperm.xlu0 %674, %v296_v19  }
  0x39   : > { %333 = vperm.xlu2 %672, %v295_v20  }
  0x40   : > { %675 = vset.pattern.permute.xlu1 %v790_v0  ;;  %677 = vset.pattern.permute.xlu0 %v790_v0 }
  0x41   : > { %676 = vset.pattern.permute.xlu2 %v790_v0 }
  0x7a   : > { %v302_v23 = vpop.permute.xlu2 %301 }
  0x7b   : > { %v934_v28 = vsub.f32 %v298_v27, %v302_v23 }
  0x7d   : > { %399 = vst [vmem:[%s936_s11] sm:$0xff] %v934_v28 }
  0x82   : > { %v307_v29 = vpop.permute.xlu2 %306 }
  0x83   : > { %v320_v30 = vsub.f32 %v298_v27, %v307_v29 }
  0x85   : > { %400 = vst [vmem:[%s936_s11 + $0x8] sm:$0xff] %v320_v30  ;;  %v345_v50 = vmul.f32 %v320_v30, %v320_v30 }
  0x8b   : > { %v326_v35 = vpop.permute.xlu2 %325 }
  0x8c   : > { %v340_v36 = vsub.f32 %v323_v33, %v326_v35 }
  0x8e   : > { %591 = vst [vmem:[%s936_s11 + $0x20] sm:$0xff] %v340_v36 }
  0x91   : > { %v274_v31 = vpop.permute.xlu0 %273  ;;  %v278_v32 = vpop.permute.xlu1 %277 }
  0x92   : > { %vm281_vm5 = vcmp.ne.s32.totalorder %v274_v31, 0  ;;  %vm283_vm7 = vcmp.ne.s32.totalorder %v278_v32, 0 }
  0x93   : > { %vm285_vm6 = vmand %vm881_vm0, %vm281_vm5  ;;  %v334_v41 = vpop.permute.xlu2 %333 }
  0x94   : > { %v360_v34 = vsel %vm285_vm6, 1, %v790_v0  ;;  %vm287_vm8 = vmand %vm885_vm1, %vm283_vm7  ;;  %v342_v42 = vsub.f32 %v323_v33, %v334_v41 }
  0x95   : > { %365 = vperm.xlu1 %675, %v360_v34   ;;  %v362_v39 = vsel %vm287_vm8, 1, %v790_v0 }
  0x96   : > { %593 = vst [vmem:[%s936_s11 + $0x30] sm:$0xff] %v342_v42 }
  0x99   : > { %v276_v37 = vpop.permute.xlu0 %275  ;;  %v280_v38 = vpop.permute.xlu1 %279 }
  0x9a   : > { %vm282_vm9 = vcmp.ne.s32.totalorder %v276_v37, 0  ;;  %vm284_vm11 = vcmp.ne.s32.totalorder %v280_v38, 0 }
  0x9b   : > { %vm286_vm10 = vmand %vm897_vm2, %vm282_vm9 }
  0x9c   : > { %v361_v40 = vsel %vm286_vm10, 1, %v790_v0  ;;  %vm288_vm12 = vmand %vm901_vm3, %vm284_vm11 }
  0x9d   : > { %371 = vperm.xlu1 %675, %v362_v39   ;;  %368 = vperm.xlu2 %676, %v361_v40   ;;  %v363_v45 = vsel %vm288_vm12, 1, %v790_v0 }
  0xa1   : > { %v317_v43 = vpop.permute.xlu1 %316  ;;  %v312_v44 = vpop.permute.xlu0 %311 }
  0xa2   : > { %v322_v46 = vsub.f32 %v298_v27, %v317_v43  ;;  %v321_v47 = vsub.f32 %v298_v27, %v312_v44 }
  0xa4   : > { %402 = vst [vmem:[%s936_s11 + $0x18] sm:$0xff] %v322_v46 }
  0xa5   : > { %374 = vperm.xlu2 %676, %v363_v45   ;;  %401 = vst [vmem:[%s936_s11 + $0x10] sm:$0xff] %v321_v47 }
  0xaa   : > { %v330_v48 = vpop.permute.xlu1 %329  ;;  %v338_v49 = vpop.permute.xlu0 %337 }
  0xab   : > { %v341_v51 = vsub.f32 %v323_v33, %v330_v48  ;;  %v343_v52 = vsub.f32 %v323_v33, %v338_v49 }
  0xad   : > { %v349_v53 = vmul.f32 %v341_v51, %v341_v51  ;;  %592 = vst [vmem:[%s936_s11 + $0x28] sm:$0xff] %v341_v51 }
  0xae   : > { %594 = vst [vmem:[%s936_s11 + $0x38] sm:$0xff] %v343_v52 }
  0xaf   : > { %v353_v54 = vadd.f32 %v349_v53, %v345_v50 }
  0xb0   : > { %705 = shalt.err (!%p702_p5)
}
  0xb1   : > { %s793_s10 = smov 128   ;;  %s794_s11 = smov 8   ;;  %v344_v55 = vmul.f32 %v934_v28, %v934_v28  ;;  %v348_v56 = vmul.f32 %v340_v36, %v340_v36  ;;  %v347_v58 = vmul.f32 %v322_v46, %v322_v46  ;;  %v351_v59 = vmul.f32 %v343_v52, %v343_v52 }
  0xb2   : > { %605 = dma.vmem_to_hbm [thread:$0]  (%p855_p4), %s446_s26, 1024, %s448_s27, %s414_s28, %s793_s10, %s793_s10, %s794_s11   ;;  %v346_v60 = vmul.f32 %v321_v47, %v321_v47  ;;  %v350_v61 = vmul.f32 %v342_v42, %v342_v42  ;;  %v289_v1 = vsel %vm927_vm4, 1, %v790_v0  ;;  %vm357_vm0 = vcmp.le.f32.partialorder %v353_v54, 100.0 }
  0xb3   : > { %v352_v57 = vadd.f32 %v348_v56, %v344_v55  ;;  %v355_v62 = vadd.f32 %v351_v59, %v347_v58  ;;  %v290_v2 = vrot.slane %v289_v1, 1  ;;  %s586_s18 = sshll.u32 %s925_s9, 3  ;;  %s597_s19 = sshll.u32 %s780_s15, 3 }
  0xb4   : > { %v354_v63 = vadd.f32 %v350_v61, %v346_v60  ;;  %s426_s26 = scalar_lea.hbm %s1049_s2, %s597_s19  ;;  %s226_s15 = scalar_lea.vmem [#allocation2], %s586_s18 }
  0xb5   : > { %vm291_vm13 = vcmp.ne.s32.totalorder %v290_v2, 0  ;;  %vm359_vm5 = vcmp.le.f32.partialorder %v355_v62, 100.0  ;;  %vm356_vm8 = vcmp.le.f32.partialorder %v352_v57, 100.0  ;;  %s428_s27 = sshll.u32 %s226_s15, 4  ;;  %s430_s28 = sshll.u32 %s426_s26, 4  ;;  %s429_s27 = int_to_ptr.vmem [resolvable:$true] %s428_s27  ;;  %s431_s28 = int_to_ptr.hbm [resolvable:$true] %s430_s28 }
  0xb6   : > { %vm292_vm14 = vmand %vm927_vm4, %vm291_vm13  ;;  %vm358_vm13 = vcmp.le.f32.partialorder %v354_v63, 100.0  ;;  %s409_s29 = scalar_lea.sflag [#allocation3], %s925_s9  ;;  %s720_s30 = sshra.s32 %s431_s28, 4  ;;  %s721_s30 = int_to_ptr.hbm [resolvable:$true] %s720_s30 }
  0xb7   : > { %v384_v3 = vsel %vm292_vm14, 1, %v790_v0  ;;  %s722_s4 = scalar_lea.hbm %s721_s30, 8  ;;  %s726_s7 = scalar_lea.hbm %s1049_s2, 16 }
  0xb8   : > { %v385_v4 = vperm.slane %v384_v3, 0  ;;  %p723_p6 = scmp.ne.s32.totalorder %s721_s30, %s722_s4  ;;  %p727_p10 = scmp.lt.s32.totalorder %s721_s30, %s1049_s2 }
  0xb9   : > { %p728_p11 = scmp.lt.s32.totalorder %s726_s7, %s722_s4 }
  0xba   : > { %vm983_vm15 = vcmp.eq.s32.totalorder %v385_v4, 1  ;;  %p724_p7 = pnand %p723_p6, %p855_p4 }
  0xbb   : > { %p729_p12 = por %p728_p11, %p727_p10 }
  0xbc   : > { %p725_p9 = pneg %p724_p7 }
  0xbe   : > { %p730_p13 = pnand %p729_p12, %p725_p9 }
  0xf7   : > { %v369_v6 = vpop.permute.xlu2 %368 }
  0xf8   : > { %vm377_vm1 = vcmp.eq.s32.totalorder %v369_v6, 1 }
  0xf9   : > { %vm381_vm2 = vmand %vm357_vm0, %vm377_vm1 }
  0xfa   : > { %vm388_vm3 = vmand %vm381_vm2, %vm983_vm15 }
  0xff   : > { %v375_v7 = vpop.permute.xlu2 %374 }
 0x100   : > { %vm379_vm6 = vcmp.eq.s32.totalorder %v375_v7, 1 }
 0x101   : > { %vm989_vm4 = vmand %vm359_vm5, %vm379_vm6 }
 0x102   : > { %vm390_vm7 = vmand %vm989_vm4, %vm983_vm15 }
 0x107   : > { %v366_v9 = vpop.permute.xlu1 %365 }
 0x108   : > { %vm376_vm9 = vcmp.eq.s32.totalorder %v366_v9, 1 }
 0x109   : > { %vm380_vm10 = vmand %vm356_vm8, %vm376_vm9 }
 0x10a   : > { %vm387_vm11 = vmand %vm380_vm10, %vm983_vm15 }
 0x10b   : > { %vm391_vm12 = vmpackc.low %vm388_vm3, %vm387_vm11 }
 0x10c   : > { %v393_v11 = vsel %vm391_vm12, 16711935, %v790_v0 }
 0x10f   : > { %v372_v10 = vpop.permute.xlu1 %371 }
 0x110   : > { %vm378_vm14 = vcmp.eq.s32.totalorder %v372_v10, 1 }
 0x111   : > { %vm382_vm0 = vmand %vm358_vm13, %vm378_vm14 }
 0x112   : > { %vm389_vm1 = vmand %vm382_vm0, %vm983_vm15 }
 0x113   : > { %vm392_vm2 = vmpackc.low %vm390_vm7, %vm389_vm1 }
 0x114   : > { %v394_v12 = vsel %vm392_vm2, 16711935, %v790_v0 }
 0x115   : > { %v395_v13 = vpack.c.b8 %v394_v12, %v393_v11 }
 0x117   : > { %vm396_vm3 = vnez %v395_v13 }
 0x118   : > { %v397_v14 = vsel %vm396_vm3, 16843009, %v790_v0 }
 0x119   : > { %398 = vst [vmem:[%s226_s15] sm:$0xff] %v397_v14 }
 0x11a   : > { %733 = shalt.err (!%p730_p13)
}
 0x11b   : > { %604 = dma.vmem_to_hbm [thread:$0]  (%p855_p4), %s429_s27, 128, %s431_s28, %s409_s29  }
 0x11c PF: > { %p615_p0 = scmp.ge.s32.totalorder %s788_s17, 2  ;;  %s462_s9 = sand.u32 1, %s768_s12  }
 0x11d   : > { %s463_s11 = scalar_lea.sflag [#allocation3], %s462_s9 }
 0x11e   : > { %p609_p1 = pnand %p615_p0, %p862_p8 }
 0x120   : > { %p610_p2 = pneg %p609_p1 }
 0x122   : > { %759 = dma.done.wait (%p610_p2), %s463_s11, 128  }
 0x123   : > { %761 = vsyncadd (%p610_p2), %s463_s11, 4294967168  ;;  %s473_s18 = scalar_lea.sflag [#allocation5], %s462_s9 }
 0x124   : > { %763 = dma.done.wait (%p610_p2), %s473_s18, 1024  }
 0x125   : > { %765 = vsyncadd (%p610_p2), %s473_s18, 4294966272  ;;  %s20_s17 = sadd.s32 1, %s788_s17   ;;  %s1067_s12 = smov %s772_s13 }
 0x126   : > { %p17_p3 = scmp.ge.s32.totalorder %s20_s17, 4   ;;  %s1068_s13 = smov %s776_s14 }
 0x127   : > { %s1069_s14 = smov %s868_s25  ;;  %s1070_s15 = smov %s784_s16 }
 0x128   : > { %s1071_s16 = smov %s1073_s20  ;;  %19 = sbr.rel (!%p17_p3) target bundleno = 6 (0x6), region = 84 }
 0x12d   :  { %479 = vsyncpa [#allocation3], 1 }
 0x12e   :  { %481 = vsyncpa [#allocation3 + $0x1], 1 }
 0x12f   :  { %482 = vsyncpa [#allocation5], 1 }
 0x130   :  { %484 = vsyncpa [#allocation5 + $0x1], 1 }

// kernel: get_adj_mask1_pallas.5
= control target key start
LH: loop header
LB: loop body
LE: loop exit
PB: predicated region body
PF: predicated region fallthrough
CT: control target
= control target key end

     0   :  { %9 = vsyncpa [#allocation3], 0  ;;  %s1047_s0 = inlined_call_operand.vmem [shape: f32[2,32,2], index: 0, kind: input, shape index: {}]   ;;  %s1048_s1 = inlined_call_operand.vmem [shape: f32[2,2,128], index: 1, kind: input, shape index: {}]   ;;  %s1049_s2 = inlined_call_operand.hbm [shape: s8[2,32,128], index: 2, kind: output, shape index: {0}]   ;;  %s1050_s3 = inlined_call_operand.hbm [shape: f32[2,2,32,128], index: 3, kind: output, shape index: {1}]  }
   0x1   :  { %11 = vsyncpa [#allocation3 + $0x1], 0 }
   0x2   :  { %12 = vsyncpa [#allocation5], 0 }
   0x3   :  { %14 = vsyncpa [#allocation5 + $0x1], 0  ;;  %s815_s12 = smov 0   ;;  %s817_s13 = smov 0  }
   0x4   :  { %s819_s14 = smov 0   ;;  %s821_s15 = smov 0  }
   0x5   :  { %s823_s16 = smov 0   ;;  %s825_s17 = smov 0  }
   0x6 LB: > { %s581_s18 = sadd.s32 4294967295, %s788_s17   ;;  %s582_s19 = sadd.s32 4294967294, %s788_s17   ;;  %s788_s17 = sphi %s825_s17, %s20_s17   ;;  %s784_s16 = sphi %s823_s16, %s1071_s16   ;;  %s780_s15 = sphi %s821_s15, %s1070_s15   ;;  %s776_s14 = sphi %s819_s14, %s1069_s14   ;;  %s772_s13 = sphi %s817_s13, %s1068_s13   ;;  %s768_s12 = sphi %s815_s12, %s1067_s12  }
   0x7   : > { %s39_s20 = sadd.s32 1, %s784_s16  ;;  %s106_s21 = sadd.s32 1, %s776_s14 }
   0x8   : > { %p41_p0 = scmp.ge.s32.totalorder %s39_s20, 2  ;;  %p116_p1 = scmp.ne.s32.totalorder %s776_s14, %s772_s13 }
   0x9   : > { %p117_p2 = scmp.eq.s32.totalorder %s581_s18, 1  ;;  %p122_p3 = scmp.ne.s32.totalorder %s772_s13, %s768_s12 }
   0xa   : > { %s1073_s20 = smov (%p41_p0, %s39_s20), 0  ;;  %p123_p5 = scmp.eq.s32.totalorder %s582_s19, 1 }
   0xb   : > { %p855_p4 = por %p117_p2, %p116_p1  ;;  %s99_s23 = ssub.s32 %s784_s16, %s1073_s20 }
   0xc   : > { %p585_p6 = scmp.ge.s32.totalorder %s788_s17, 1  ;;  %p104_p7 = scmp.eq.s32.totalorder %s99_s23, 0 }
   0xd   : > { %p862_p8 = por %p123_p5, %p122_p3  ;;  %p194_p9 = scmp.lt.s32.totalorder %s788_s17, 3 }
   0xe   : > { %s868_s25 = scalar_select %p104_p7, %s776_s14, %s106_s21  }
   0xf   : > { %p195_p10 = pnand %p585_p6, %p194_p9 }
  0x10   : > { %p235_p11 = scmp.lt.s32.totalorder (!%p195_p10), %s780_s15, 1  ;;  %s791_s4 = smov (!%p195_p10), 127  }
  0x11   : > { %198 = sbr.rel (%p195_p10) target bundleno = 284 (0x11c), region = 28  ;;  %s925_s9 = sand.u32 (!%p195_p10), 1, %s772_s13  }
  0x12   : > { %s587_s10 = sshll.u32 (!%p195_p10), %s925_s9, 6  ;;  %s603_s18 = sshll.u32 (!%p195_p10), %s780_s15, 6 }
  0x13   : > { %s936_s11 = scalar_lea.vmem (!%p195_p10), [#allocation4], %s587_s10  ;;  %s444_s23 = scalar_lea.hbm (!%p195_p10), %s1050_s3, %s603_s18 }
  0x14   : > { %s414_s28 = scalar_lea.sflag (!%p195_p10), [#allocation5], %s925_s9  ;;  %s698_s6 = scalar_lea.hbm (!%p195_p10), %s1050_s3, 128 }
  0x16   : > { %v790_v0 = vmov 0   ;;  %s874_s26 = scalar_select %p235_p11, %s780_s15, 1  ;;  %v792_v21 = vmov 1  }
  0x17   : > { %671 = vset.pattern.permute.xlu1 %v790_v0  ;;  %670 = vset.pattern.permute.xlu0 %v790_v0 }
  0x18   : > { %669 = vset.pattern.permute.xlu2 %v790_v0  ;;  %s602_s27 = sshll.u32 %s874_s26, 5  ;;  %s590_s5 = sshll.u32 %s874_s26, 1 }
  0x19   : > { %s242_s30 = scalar_lea.vmem %s1047_s0, %s602_s27  ;;  %s250_s8 = scalar_lea.vmem %s1048_s1, %s590_s5 }
  0x1a   : > { %v254_v1 = vld [vmem:[%s242_s30] sm:$0xff]  ;;  %v256_v2 = vld [vmem:[%s242_s30 + $0x10] sm:$0xff]  ;;  %v255_v3 = vld [vmem:[%s242_s30 + $0x8] sm:$0xff]  ;;  %s445_s26 = sshll.u32 %s936_s11, 4  ;;  %s447_s27 = sshll.u32 %s444_s23, 4  ;;  %s446_s26 = int_to_ptr.vmem [resolvable:$true] %s445_s26  ;;  %s448_s27 = int_to_ptr.hbm [resolvable:$true] %s447_s27 }
  0x1b   : > { %v259_v4 = vand.u32 2147483647, %v254_v1  ;;  %v261_v5 = vand.u32 2147483647, %v256_v2  ;;  %v257_v6 = vld [vmem:[%s242_s30 + $0x18] sm:$0xff]  ;;  %s692_s29 = sshra.s32 %s448_s27, 4  ;;  %s693_s29 = int_to_ptr.hbm [resolvable:$true] %s692_s29 }
  0x1c   : > { %v260_v9 = vand.u32 2147483647, %v255_v3  ;;  %v262_v10 = vand.u32 2147483647, %v257_v6  ;;  %v258_v22 = vld [vmem:[%s250_s8] sm:$0x3]  ;;  %p699_p1 = scmp.lt.s32.totalorder %s693_s29, %s1050_s3 }
  0x1d   : > { %vm881_vm0 = vcmp.lt.f32.partialorder %v259_v4, inf  ;;  %vm885_vm1 = vcmp.lt.f32.partialorder %v261_v5, inf  ;;  %v267_v24 = vand.u32 2147483647, %v258_v22  ;;  %s694_s30 = scalar_lea.hbm %s693_s29, 64 }
  0x1e   : > { %v269_v11 = vsel %vm881_vm0, 1, %v790_v0  ;;  %v271_v12 = vsel %vm885_vm1, 1, %v790_v0  ;;  %v293_v13 = vsel %vm881_vm0, %v254_v1, 0.0  ;;  %vm897_vm2 = vcmp.lt.f32.partialorder %v260_v9, inf  ;;  %p695_p12 = scmp.ne.s32.totalorder %s693_s29, %s694_s30  ;;  %p700_p2 = scmp.lt.s32.totalorder %s698_s6, %s694_s30 }
  0x1f   : > { %273 = vrot.lane.b32.xlu0 %v269_v11, %s791_s4  ;;  %277 = vrot.lane.b32.xlu1 %v271_v12, %s791_s4  ;;  %vm901_vm3 = vcmp.lt.f32.partialorder %v262_v10, inf  ;;  %v270_v16 = vsel %vm897_vm2, 1, %v790_v0  ;;  %v294_v18 = vsel %vm897_vm2, %v255_v3, 0.0  ;;  %v295_v20 = vsel %vm885_vm1, %v256_v2, 0.0 }
  0x20   : > { %301 = vperm.xlu2 %669, %v293_v13   ;;  %v272_v17 = vsel %vm901_vm3, 1, %v790_v0  ;;  %v296_v19 = vsel %vm901_vm3, %v257_v6, 0.0  ;;  %vm927_vm4 = vcmp.lt.f32.partialorder %v267_v24, inf  ;;  %p696_p13 = pnand %p695_p12, %p855_p4  ;;  %p701_p3 = por %p700_p2, %p699_p1 }
  0x21   : > { %v297_v26 = vsel %vm927_vm4, %v258_v22, 0.0 }
  0x22   : > { %v298_v27 = vperm.slane %v297_v26, 0  ;;  %v323_v33 = vperm.slane %v297_v26, 1  ;;  %p697_p0 = pneg %p696_p13 }
  0x24   : > { %p702_p5 = pnand %p701_p3, %p697_p0 }
  0x27   : > { %275 = vrot.lane.b32.xlu0 %v270_v16, %s791_s4  ;;  %279 = vrot.lane.b32.xlu1 %v272_v17, %s791_s4 }
  0x28   : > { %306 = vperm.xlu2 %669, %v294_v18  }
  0x2f   : > { %316 = vperm.xlu1 %671, %v296_v19   ;;  %311 = vperm.xlu0 %670, %v295_v20  }
  0x30   : > { %672 = vset.pattern.permute.xlu2 %v792_v21 }
  0x31   : > { %325 = vperm.xlu2 %672, %v293_v13  }
  0x37   : > { %673 = vset.pattern.permute.xlu1 %v792_v21  ;;  %674 = vset.pattern.permute.xlu0 %v792_v21 }
  0x38   : > { %329 = vperm.xlu1 %673, %v294_v18   ;;  %337 = vperm.xlu0 %674, %v296_v19  }
  0x39   : > { %333 = vperm.xlu2 %672, %v295_v20  }
  0x40   : > { %675 = vset.pattern.permute.xlu1 %v790_v0  ;;  %677 = vset.pattern.permute.xlu0 %v790_v0 }
  0x41   : > { %676 = vset.pattern.permute.xlu2 %v790_v0 }
  0x7a   : > { %v302_v23 = vpop.permute.xlu2 %301 }
  0x7b   : > { %v934_v28 = vsub.f32 %v298_v27, %v302_v23 }
  0x7d   : > { %399 = vst [vmem:[%s936_s11] sm:$0xff] %v934_v28 }
  0x82   : > { %v307_v29 = vpop.permute.xlu2 %306 }
  0x83   : > { %v320_v30 = vsub.f32 %v298_v27, %v307_v29 }
  0x85   : > { %400 = vst [vmem:[%s936_s11 + $0x8] sm:$0xff] %v320_v30  ;;  %v345_v50 = vmul.f32 %v320_v30, %v320_v30 }
  0x8b   : > { %v326_v35 = vpop.permute.xlu2 %325 }
  0x8c   : > { %v340_v36 = vsub.f32 %v323_v33, %v326_v35 }
  0x8e   : > { %591 = vst [vmem:[%s936_s11 + $0x20] sm:$0xff] %v340_v36 }
  0x91   : > { %v274_v31 = vpop.permute.xlu0 %273  ;;  %v278_v32 = vpop.permute.xlu1 %277 }
  0x92   : > { %vm281_vm5 = vcmp.ne.s32.totalorder %v274_v31, 0  ;;  %vm283_vm7 = vcmp.ne.s32.totalorder %v278_v32, 0 }
  0x93   : > { %vm285_vm6 = vmand %vm881_vm0, %vm281_vm5  ;;  %v334_v41 = vpop.permute.xlu2 %333 }
  0x94   : > { %v360_v34 = vsel %vm285_vm6, 1, %v790_v0  ;;  %vm287_vm8 = vmand %vm885_vm1, %vm283_vm7  ;;  %v342_v42 = vsub.f32 %v323_v33, %v334_v41 }
  0x95   : > { %365 = vperm.xlu1 %675, %v360_v34   ;;  %v362_v39 = vsel %vm287_vm8, 1, %v790_v0 }
  0x96   : > { %593 = vst [vmem:[%s936_s11 + $0x30] sm:$0xff] %v342_v42 }
  0x99   : > { %v276_v37 = vpop.permute.xlu0 %275  ;;  %v280_v38 = vpop.permute.xlu1 %279 }
  0x9a   : > { %vm282_vm9 = vcmp.ne.s32.totalorder %v276_v37, 0  ;;  %vm284_vm11 = vcmp.ne.s32.totalorder %v280_v38, 0 }
  0x9b   : > { %vm286_vm10 = vmand %vm897_vm2, %vm282_vm9 }
  0x9c   : > { %v361_v40 = vsel %vm286_vm10, 1, %v790_v0  ;;  %vm288_vm12 = vmand %vm901_vm3, %vm284_vm11 }
  0x9d   : > { %371 = vperm.xlu1 %675, %v362_v39   ;;  %368 = vperm.xlu2 %676, %v361_v40   ;;  %v363_v45 = vsel %vm288_vm12, 1, %v790_v0 }
  0xa1   : > { %v317_v43 = vpop.permute.xlu1 %316  ;;  %v312_v44 = vpop.permute.xlu0 %311 }
  0xa2   : > { %v322_v46 = vsub.f32 %v298_v27, %v317_v43  ;;  %v321_v47 = vsub.f32 %v298_v27, %v312_v44 }
  0xa4   : > { %402 = vst [vmem:[%s936_s11 + $0x18] sm:$0xff] %v322_v46 }
  0xa5   : > { %374 = vperm.xlu2 %676, %v363_v45   ;;  %401 = vst [vmem:[%s936_s11 + $0x10] sm:$0xff] %v321_v47 }
  0xaa   : > { %v330_v48 = vpop.permute.xlu1 %329  ;;  %v338_v49 = vpop.permute.xlu0 %337 }
  0xab   : > { %v341_v51 = vsub.f32 %v323_v33, %v330_v48  ;;  %v343_v52 = vsub.f32 %v323_v33, %v338_v49 }
  0xad   : > { %v349_v53 = vmul.f32 %v341_v51, %v341_v51  ;;  %592 = vst [vmem:[%s936_s11 + $0x28] sm:$0xff] %v341_v51 }
  0xae   : > { %594 = vst [vmem:[%s936_s11 + $0x38] sm:$0xff] %v343_v52 }
  0xaf   : > { %v353_v54 = vadd.f32 %v349_v53, %v345_v50 }
  0xb0   : > { %705 = shalt.err (!%p702_p5)
}
  0xb1   : > { %s793_s10 = smov 128   ;;  %s794_s11 = smov 8   ;;  %v344_v55 = vmul.f32 %v934_v28, %v934_v28  ;;  %v348_v56 = vmul.f32 %v340_v36, %v340_v36  ;;  %v347_v58 = vmul.f32 %v322_v46, %v322_v46  ;;  %v351_v59 = vmul.f32 %v343_v52, %v343_v52 }
  0xb2   : > { %605 = dma.vmem_to_hbm [thread:$0]  (%p855_p4), %s446_s26, 1024, %s448_s27, %s414_s28, %s793_s10, %s793_s10, %s794_s11   ;;  %v346_v60 = vmul.f32 %v321_v47, %v321_v47  ;;  %v350_v61 = vmul.f32 %v342_v42, %v342_v42  ;;  %v289_v1 = vsel %vm927_vm4, 1, %v790_v0  ;;  %vm357_vm0 = vcmp.le.f32.partialorder %v353_v54, 2500.0 }
  0xb3   : > { %v352_v57 = vadd.f32 %v348_v56, %v344_v55  ;;  %v355_v62 = vadd.f32 %v351_v59, %v347_v58  ;;  %v290_v2 = vrot.slane %v289_v1, 1  ;;  %s586_s18 = sshll.u32 %s925_s9, 3  ;;  %s597_s19 = sshll.u32 %s780_s15, 3 }
  0xb4   : > { %v354_v63 = vadd.f32 %v350_v61, %v346_v60  ;;  %s426_s26 = scalar_lea.hbm %s1049_s2, %s597_s19  ;;  %s226_s15 = scalar_lea.vmem [#allocation2], %s586_s18 }
  0xb5   : > { %vm291_vm13 = vcmp.ne.s32.totalorder %v290_v2, 0  ;;  %vm359_vm5 = vcmp.le.f32.partialorder %v355_v62, 2500.0  ;;  %vm356_vm8 = vcmp.le.f32.partialorder %v352_v57, 2500.0  ;;  %s428_s27 = sshll.u32 %s226_s15, 4  ;;  %s430_s28 = sshll.u32 %s426_s26, 4  ;;  %s429_s27 = int_to_ptr.vmem [resolvable:$true] %s428_s27  ;;  %s431_s28 = int_to_ptr.hbm [resolvable:$true] %s430_s28 }
  0xb6   : > { %vm292_vm14 = vmand %vm927_vm4, %vm291_vm13  ;;  %vm358_vm13 = vcmp.le.f32.partialorder %v354_v63, 2500.0  ;;  %s409_s29 = scalar_lea.sflag [#allocation3], %s925_s9  ;;  %s720_s30 = sshra.s32 %s431_s28, 4  ;;  %s721_s30 = int_to_ptr.hbm [resolvable:$true] %s720_s30 }
  0xb7   : > { %v384_v3 = vsel %vm292_vm14, 1, %v790_v0  ;;  %s722_s4 = scalar_lea.hbm %s721_s30, 8  ;;  %s726_s7 = scalar_lea.hbm %s1049_s2, 16 }
  0xb8   : > { %v385_v4 = vperm.slane %v384_v3, 0  ;;  %p723_p6 = scmp.ne.s32.totalorder %s721_s30, %s722_s4  ;;  %p727_p10 = scmp.lt.s32.totalorder %s721_s30, %s1049_s2 }
  0xb9   : > { %p728_p11 = scmp.lt.s32.totalorder %s726_s7, %s722_s4 }
  0xba   : > { %vm983_vm15 = vcmp.eq.s32.totalorder %v385_v4, 1  ;;  %p724_p7 = pnand %p723_p6, %p855_p4 }
  0xbb   : > { %p729_p12 = por %p728_p11, %p727_p10 }
  0xbc   : > { %p725_p9 = pneg %p724_p7 }
  0xbe   : > { %p730_p13 = pnand %p729_p12, %p725_p9 }
  0xf7   : > { %v369_v6 = vpop.permute.xlu2 %368 }
  0xf8   : > { %vm377_vm1 = vcmp.eq.s32.totalorder %v369_v6, 1 }
  0xf9   : > { %vm381_vm2 = vmand %vm357_vm0, %vm377_vm1 }
  0xfa   : > { %vm388_vm3 = vmand %vm381_vm2, %vm983_vm15 }
  0xff   : > { %v375_v7 = vpop.permute.xlu2 %374 }
 0x100   : > { %vm379_vm6 = vcmp.eq.s32.totalorder %v375_v7, 1 }
 0x101   : > { %vm989_vm4 = vmand %vm359_vm5, %vm379_vm6 }
 0x102   : > { %vm390_vm7 = vmand %vm989_vm4, %vm983_vm15 }
 0x107   : > { %v366_v9 = vpop.permute.xlu1 %365 }
 0x108   : > { %vm376_vm9 = vcmp.eq.s32.totalorder %v366_v9, 1 }
 0x109   : > { %vm380_vm10 = vmand %vm356_vm8, %vm376_vm9 }
 0x10a   : > { %vm387_vm11 = vmand %vm380_vm10, %vm983_vm15 }
 0x10b   : > { %vm391_vm12 = vmpackc.low %vm388_vm3, %vm387_vm11 }
 0x10c   : > { %v393_v11 = vsel %vm391_vm12, 16711935, %v790_v0 }
 0x10f   : > { %v372_v10 = vpop.permute.xlu1 %371 }
 0x110   : > { %vm378_vm14 = vcmp.eq.s32.totalorder %v372_v10, 1 }
 0x111   : > { %vm382_vm0 = vmand %vm358_vm13, %vm378_vm14 }
 0x112   : > { %vm389_vm1 = vmand %vm382_vm0, %vm983_vm15 }
 0x113   : > { %vm392_vm2 = vmpackc.low %vm390_vm7, %vm389_vm1 }
 0x114   : > { %v394_v12 = vsel %vm392_vm2, 16711935, %v790_v0 }
 0x115   : > { %v395_v13 = vpack.c.b8 %v394_v12, %v393_v11 }
 0x117   : > { %vm396_vm3 = vnez %v395_v13 }
 0x118   : > { %v397_v14 = vsel %vm396_vm3, 16843009, %v790_v0 }
 0x119   : > { %398 = vst [vmem:[%s226_s15] sm:$0xff] %v397_v14 }
 0x11a   : > { %733 = shalt.err (!%p730_p13)
}
 0x11b   : > { %604 = dma.vmem_to_hbm [thread:$0]  (%p855_p4), %s429_s27, 128, %s431_s28, %s409_s29  }
 0x11c PF: > { %p615_p0 = scmp.ge.s32.totalorder %s788_s17, 2  ;;  %s462_s9 = sand.u32 1, %s768_s12  }
 0x11d   : > { %s463_s11 = scalar_lea.sflag [#allocation3], %s462_s9 }
 0x11e   : > { %p609_p1 = pnand %p615_p0, %p862_p8 }
 0x120   : > { %p610_p2 = pneg %p609_p1 }
 0x122   : > { %759 = dma.done.wait (%p610_p2), %s463_s11, 128  }
 0x123   : > { %761 = vsyncadd (%p610_p2), %s463_s11, 4294967168  ;;  %s473_s18 = scalar_lea.sflag [#allocation5], %s462_s9 }
 0x124   : > { %763 = dma.done.wait (%p610_p2), %s473_s18, 1024  }
 0x125   : > { %765 = vsyncadd (%p610_p2), %s473_s18, 4294966272  ;;  %s20_s17 = sadd.s32 1, %s788_s17   ;;  %s1067_s12 = smov %s772_s13 }
 0x126   : > { %p17_p3 = scmp.ge.s32.totalorder %s20_s17, 4   ;;  %s1068_s13 = smov %s776_s14 }
 0x127   : > { %s1069_s14 = smov %s868_s25  ;;  %s1070_s15 = smov %s784_s16 }
 0x128   : > { %s1071_s16 = smov %s1073_s20  ;;  %19 = sbr.rel (!%p17_p3) target bundleno = 6 (0x6), region = 84 }
 0x12d   :  { %479 = vsyncpa [#allocation3], 1 }
 0x12e   :  { %481 = vsyncpa [#allocation3 + $0x1], 1 }
 0x12f   :  { %482 = vsyncpa [#allocation5], 1 }
 0x130   :  { %484 = vsyncpa [#allocation5 + $0x1], 1 }

// kernel: get_adj_mask1_pallas.7
= control target key start
LH: loop header
LB: loop body
LE: loop exit
PB: predicated region body
PF: predicated region fallthrough
CT: control target
= control target key end

     0   :  { %9 = vsyncpa [#allocation3], 0  ;;  %s1047_s0 = inlined_call_operand.vmem [shape: f32[2,32,2], index: 0, kind: input, shape index: {}]   ;;  %s1048_s1 = inlined_call_operand.vmem [shape: f32[2,2,128], index: 1, kind: input, shape index: {}]   ;;  %s1049_s2 = inlined_call_operand.hbm [shape: s8[2,32,128], index: 2, kind: output, shape index: {0}]   ;;  %s1050_s3 = inlined_call_operand.hbm [shape: f32[2,2,32,128], index: 3, kind: output, shape index: {1}]  }
   0x1   :  { %11 = vsyncpa [#allocation3 + $0x1], 0 }
   0x2   :  { %12 = vsyncpa [#allocation5], 0 }
   0x3   :  { %14 = vsyncpa [#allocation5 + $0x1], 0  ;;  %s815_s12 = smov 0   ;;  %s817_s13 = smov 0  }
   0x4   :  { %s819_s14 = smov 0   ;;  %s821_s15 = smov 0  }
   0x5   :  { %s823_s16 = smov 0   ;;  %s825_s17 = smov 0  }
   0x6 LB: > { %s581_s18 = sadd.s32 4294967295, %s788_s17   ;;  %s582_s19 = sadd.s32 4294967294, %s788_s17   ;;  %s788_s17 = sphi %s825_s17, %s20_s17   ;;  %s784_s16 = sphi %s823_s16, %s1071_s16   ;;  %s780_s15 = sphi %s821_s15, %s1070_s15   ;;  %s776_s14 = sphi %s819_s14, %s1069_s14   ;;  %s772_s13 = sphi %s817_s13, %s1068_s13   ;;  %s768_s12 = sphi %s815_s12, %s1067_s12  }
   0x7   : > { %s39_s20 = sadd.s32 1, %s784_s16  ;;  %s106_s21 = sadd.s32 1, %s776_s14 }
   0x8   : > { %p41_p0 = scmp.ge.s32.totalorder %s39_s20, 2  ;;  %p116_p1 = scmp.ne.s32.totalorder %s776_s14, %s772_s13 }
   0x9   : > { %p117_p2 = scmp.eq.s32.totalorder %s581_s18, 1  ;;  %p122_p3 = scmp.ne.s32.totalorder %s772_s13, %s768_s12 }
   0xa   : > { %s1073_s20 = smov (%p41_p0, %s39_s20), 0  ;;  %p123_p5 = scmp.eq.s32.totalorder %s582_s19, 1 }
   0xb   : > { %p855_p4 = por %p117_p2, %p116_p1  ;;  %s99_s23 = ssub.s32 %s784_s16, %s1073_s20 }
   0xc   : > { %p585_p6 = scmp.ge.s32.totalorder %s788_s17, 1  ;;  %p104_p7 = scmp.eq.s32.totalorder %s99_s23, 0 }
   0xd   : > { %p862_p8 = por %p123_p5, %p122_p3  ;;  %p194_p9 = scmp.lt.s32.totalorder %s788_s17, 3 }
   0xe   : > { %s868_s25 = scalar_select %p104_p7, %s776_s14, %s106_s21  }
   0xf   : > { %p195_p10 = pnand %p585_p6, %p194_p9 }
  0x10   : > { %p235_p11 = scmp.lt.s32.totalorder (!%p195_p10), %s780_s15, 1  ;;  %s791_s4 = smov (!%p195_p10), 127  }
  0x11   : > { %198 = sbr.rel (%p195_p10) target bundleno = 284 (0x11c), region = 28  ;;  %s925_s9 = sand.u32 (!%p195_p10), 1, %s772_s13  }
  0x12   : > { %s587_s10 = sshll.u32 (!%p195_p10), %s925_s9, 6  ;;  %s603_s18 = sshll.u32 (!%p195_p10), %s780_s15, 6 }
  0x13   : > { %s936_s11 = scalar_lea.vmem (!%p195_p10), [#allocation4], %s587_s10  ;;  %s444_s23 = scalar_lea.hbm (!%p195_p10), %s1050_s3, %s603_s18 }
  0x14   : > { %s414_s28 = scalar_lea.sflag (!%p195_p10), [#allocation5], %s925_s9  ;;  %s698_s6 = scalar_lea.hbm (!%p195_p10), %s1050_s3, 128 }
  0x16   : > { %v790_v0 = vmov 0   ;;  %s874_s26 = scalar_select %p235_p11, %s780_s15, 1  ;;  %v792_v21 = vmov 1  }
  0x17   : > { %671 = vset.pattern.permute.xlu1 %v790_v0  ;;  %670 = vset.pattern.permute.xlu0 %v790_v0 }
  0x18   : > { %669 = vset.pattern.permute.xlu2 %v790_v0  ;;  %s602_s27 = sshll.u32 %s874_s26, 5  ;;  %s590_s5 = sshll.u32 %s874_s26, 1 }
  0x19   : > { %s242_s30 = scalar_lea.vmem %s1047_s0, %s602_s27  ;;  %s250_s8 = scalar_lea.vmem %s1048_s1, %s590_s5 }
  0x1a   : > { %v254_v1 = vld [vmem:[%s242_s30] sm:$0xff]  ;;  %v256_v2 = vld [vmem:[%s242_s30 + $0x10] sm:$0xff]  ;;  %v255_v3 = vld [vmem:[%s242_s30 + $0x8] sm:$0xff]  ;;  %s445_s26 = sshll.u32 %s936_s11, 4  ;;  %s447_s27 = sshll.u32 %s444_s23, 4  ;;  %s446_s26 = int_to_ptr.vmem [resolvable:$true] %s445_s26  ;;  %s448_s27 = int_to_ptr.hbm [resolvable:$true] %s447_s27 }
  0x1b   : > { %v259_v4 = vand.u32 2147483647, %v254_v1  ;;  %v261_v5 = vand.u32 2147483647, %v256_v2  ;;  %v257_v6 = vld [vmem:[%s242_s30 + $0x18] sm:$0xff]  ;;  %s692_s29 = sshra.s32 %s448_s27, 4  ;;  %s693_s29 = int_to_ptr.hbm [resolvable:$true] %s692_s29 }
  0x1c   : > { %v260_v9 = vand.u32 2147483647, %v255_v3  ;;  %v262_v10 = vand.u32 2147483647, %v257_v6  ;;  %v258_v22 = vld [vmem:[%s250_s8] sm:$0x3]  ;;  %p699_p1 = scmp.lt.s32.totalorder %s693_s29, %s1050_s3 }
  0x1d   : > { %vm881_vm0 = vcmp.lt.f32.partialorder %v259_v4, inf  ;;  %vm885_vm1 = vcmp.lt.f32.partialorder %v261_v5, inf  ;;  %v267_v24 = vand.u32 2147483647, %v258_v22  ;;  %s694_s30 = scalar_lea.hbm %s693_s29, 64 }
  0x1e   : > { %v269_v11 = vsel %vm881_vm0, 1, %v790_v0  ;;  %v271_v12 = vsel %vm885_vm1, 1, %v790_v0  ;;  %v293_v13 = vsel %vm881_vm0, %v254_v1, 0.0  ;;  %vm897_vm2 = vcmp.lt.f32.partialorder %v260_v9, inf  ;;  %p695_p12 = scmp.ne.s32.totalorder %s693_s29, %s694_s30  ;;  %p700_p2 = scmp.lt.s32.totalorder %s698_s6, %s694_s30 }
  0x1f   : > { %273 = vrot.lane.b32.xlu0 %v269_v11, %s791_s4  ;;  %277 = vrot.lane.b32.xlu1 %v271_v12, %s791_s4  ;;  %vm901_vm3 = vcmp.lt.f32.partialorder %v262_v10, inf  ;;  %v270_v16 = vsel %vm897_vm2, 1, %v790_v0  ;;  %v294_v18 = vsel %vm897_vm2, %v255_v3, 0.0  ;;  %v295_v20 = vsel %vm885_vm1, %v256_v2, 0.0 }
  0x20   : > { %301 = vperm.xlu2 %669, %v293_v13   ;;  %v272_v17 = vsel %vm901_vm3, 1, %v790_v0  ;;  %v296_v19 = vsel %vm901_vm3, %v257_v6, 0.0  ;;  %vm927_vm4 = vcmp.lt.f32.partialorder %v267_v24, inf  ;;  %p696_p13 = pnand %p695_p12, %p855_p4  ;;  %p701_p3 = por %p700_p2, %p699_p1 }
  0x21   : > { %v297_v26 = vsel %vm927_vm4, %v258_v22, 0.0 }
  0x22   : > { %v298_v27 = vperm.slane %v297_v26, 0  ;;  %v323_v33 = vperm.slane %v297_v26, 1  ;;  %p697_p0 = pneg %p696_p13 }
  0x24   : > { %p702_p5 = pnand %p701_p3, %p697_p0 }
  0x27   : > { %275 = vrot.lane.b32.xlu0 %v270_v16, %s791_s4  ;;  %279 = vrot.lane.b32.xlu1 %v272_v17, %s791_s4 }
  0x28   : > { %306 = vperm.xlu2 %669, %v294_v18  }
  0x2f   : > { %316 = vperm.xlu1 %671, %v296_v19   ;;  %311 = vperm.xlu0 %670, %v295_v20  }
  0x30   : > { %672 = vset.pattern.permute.xlu2 %v792_v21 }
  0x31   : > { %325 = vperm.xlu2 %672, %v293_v13  }
  0x37   : > { %673 = vset.pattern.permute.xlu1 %v792_v21  ;;  %674 = vset.pattern.permute.xlu0 %v792_v21 }
  0x38   : > { %329 = vperm.xlu1 %673, %v294_v18   ;;  %337 = vperm.xlu0 %674, %v296_v19  }
  0x39   : > { %333 = vperm.xlu2 %672, %v295_v20  }
  0x40   : > { %675 = vset.pattern.permute.xlu1 %v790_v0  ;;  %677 = vset.pattern.permute.xlu0 %v790_v0 }
  0x41   : > { %676 = vset.pattern.permute.xlu2 %v790_v0 }
  0x7a   : > { %v302_v23 = vpop.permute.xlu2 %301 }
  0x7b   : > { %v934_v28 = vsub.f32 %v298_v27, %v302_v23 }
  0x7d   : > { %399 = vst [vmem:[%s936_s11] sm:$0xff] %v934_v28 }
  0x82   : > { %v307_v29 = vpop.permute.xlu2 %306 }
  0x83   : > { %v320_v30 = vsub.f32 %v298_v27, %v307_v29 }
  0x85   : > { %400 = vst [vmem:[%s936_s11 + $0x8] sm:$0xff] %v320_v30  ;;  %v345_v50 = vmul.f32 %v320_v30, %v320_v30 }
  0x8b   : > { %v326_v35 = vpop.permute.xlu2 %325 }
  0x8c   : > { %v340_v36 = vsub.f32 %v323_v33, %v326_v35 }
  0x8e   : > { %591 = vst [vmem:[%s936_s11 + $0x20] sm:$0xff] %v340_v36 }
  0x91   : > { %v274_v31 = vpop.permute.xlu0 %273  ;;  %v278_v32 = vpop.permute.xlu1 %277 }
  0x92   : > { %vm281_vm5 = vcmp.ne.s32.totalorder %v274_v31, 0  ;;  %vm283_vm7 = vcmp.ne.s32.totalorder %v278_v32, 0 }
  0x93   : > { %vm285_vm6 = vmand %vm881_vm0, %vm281_vm5  ;;  %v334_v41 = vpop.permute.xlu2 %333 }
  0x94   : > { %v360_v34 = vsel %vm285_vm6, 1, %v790_v0  ;;  %vm287_vm8 = vmand %vm885_vm1, %vm283_vm7  ;;  %v342_v42 = vsub.f32 %v323_v33, %v334_v41 }
  0x95   : > { %365 = vperm.xlu1 %675, %v360_v34   ;;  %v362_v39 = vsel %vm287_vm8, 1, %v790_v0 }
  0x96   : > { %593 = vst [vmem:[%s936_s11 + $0x30] sm:$0xff] %v342_v42 }
  0x99   : > { %v276_v37 = vpop.permute.xlu0 %275  ;;  %v280_v38 = vpop.permute.xlu1 %279 }
  0x9a   : > { %vm282_vm9 = vcmp.ne.s32.totalorder %v276_v37, 0  ;;  %vm284_vm11 = vcmp.ne.s32.totalorder %v280_v38, 0 }
  0x9b   : > { %vm286_vm10 = vmand %vm897_vm2, %vm282_vm9 }
  0x9c   : > { %v361_v40 = vsel %vm286_vm10, 1, %v790_v0  ;;  %vm288_vm12 = vmand %vm901_vm3, %vm284_vm11 }
  0x9d   : > { %371 = vperm.xlu1 %675, %v362_v39   ;;  %368 = vperm.xlu2 %676, %v361_v40   ;;  %v363_v45 = vsel %vm288_vm12, 1, %v790_v0 }
  0xa1   : > { %v317_v43 = vpop.permute.xlu1 %316  ;;  %v312_v44 = vpop.permute.xlu0 %311 }
  0xa2   : > { %v322_v46 = vsub.f32 %v298_v27, %v317_v43  ;;  %v321_v47 = vsub.f32 %v298_v27, %v312_v44 }
  0xa4   : > { %402 = vst [vmem:[%s936_s11 + $0x18] sm:$0xff] %v322_v46 }
  0xa5   : > { %374 = vperm.xlu2 %676, %v363_v45   ;;  %401 = vst [vmem:[%s936_s11 + $0x10] sm:$0xff] %v321_v47 }
  0xaa   : > { %v330_v48 = vpop.permute.xlu1 %329  ;;  %v338_v49 = vpop.permute.xlu0 %337 }
  0xab   : > { %v341_v51 = vsub.f32 %v323_v33, %v330_v48  ;;  %v343_v52 = vsub.f32 %v323_v33, %v338_v49 }
  0xad   : > { %v349_v53 = vmul.f32 %v341_v51, %v341_v51  ;;  %592 = vst [vmem:[%s936_s11 + $0x28] sm:$0xff] %v341_v51 }
  0xae   : > { %594 = vst [vmem:[%s936_s11 + $0x38] sm:$0xff] %v343_v52 }
  0xaf   : > { %v353_v54 = vadd.f32 %v349_v53, %v345_v50 }
  0xb0   : > { %705 = shalt.err (!%p702_p5)
}
  0xb1   : > { %s793_s10 = smov 128   ;;  %s794_s11 = smov 8   ;;  %v344_v55 = vmul.f32 %v934_v28, %v934_v28  ;;  %v348_v56 = vmul.f32 %v340_v36, %v340_v36  ;;  %v347_v58 = vmul.f32 %v322_v46, %v322_v46  ;;  %v351_v59 = vmul.f32 %v343_v52, %v343_v52 }
  0xb2   : > { %605 = dma.vmem_to_hbm [thread:$0]  (%p855_p4), %s446_s26, 1024, %s448_s27, %s414_s28, %s793_s10, %s793_s10, %s794_s11   ;;  %v346_v60 = vmul.f32 %v321_v47, %v321_v47  ;;  %v350_v61 = vmul.f32 %v342_v42, %v342_v42  ;;  %v289_v1 = vsel %vm927_vm4, 1, %v790_v0  ;;  %vm357_vm0 = vcmp.le.f32.partialorder %v353_v54, 10000.0 }
  0xb3   : > { %v352_v57 = vadd.f32 %v348_v56, %v344_v55  ;;  %v355_v62 = vadd.f32 %v351_v59, %v347_v58  ;;  %v290_v2 = vrot.slane %v289_v1, 1  ;;  %s586_s18 = sshll.u32 %s925_s9, 3  ;;  %s597_s19 = sshll.u32 %s780_s15, 3 }
  0xb4   : > { %v354_v63 = vadd.f32 %v350_v61, %v346_v60  ;;  %s426_s26 = scalar_lea.hbm %s1049_s2, %s597_s19  ;;  %s226_s15 = scalar_lea.vmem [#allocation2], %s586_s18 }
  0xb5   : > { %vm291_vm13 = vcmp.ne.s32.totalorder %v290_v2, 0  ;;  %vm359_vm5 = vcmp.le.f32.partialorder %v355_v62, 10000.0  ;;  %vm356_vm8 = vcmp.le.f32.partialorder %v352_v57, 10000.0  ;;  %s428_s27 = sshll.u32 %s226_s15, 4  ;;  %s430_s28 = sshll.u32 %s426_s26, 4  ;;  %s429_s27 = int_to_ptr.vmem [resolvable:$true] %s428_s27  ;;  %s431_s28 = int_to_ptr.hbm [resolvable:$true] %s430_s28 }
  0xb6   : > { %vm292_vm14 = vmand %vm927_vm4, %vm291_vm13  ;;  %vm358_vm13 = vcmp.le.f32.partialorder %v354_v63, 10000.0  ;;  %s409_s29 = scalar_lea.sflag [#allocation3], %s925_s9  ;;  %s720_s30 = sshra.s32 %s431_s28, 4  ;;  %s721_s30 = int_to_ptr.hbm [resolvable:$true] %s720_s30 }
  0xb7   : > { %v384_v3 = vsel %vm292_vm14, 1, %v790_v0  ;;  %s722_s4 = scalar_lea.hbm %s721_s30, 8  ;;  %s726_s7 = scalar_lea.hbm %s1049_s2, 16 }
  0xb8   : > { %v385_v4 = vperm.slane %v384_v3, 0  ;;  %p723_p6 = scmp.ne.s32.totalorder %s721_s30, %s722_s4  ;;  %p727_p10 = scmp.lt.s32.totalorder %s721_s30, %s1049_s2 }
  0xb9   : > { %p728_p11 = scmp.lt.s32.totalorder %s726_s7, %s722_s4 }
  0xba   : > { %vm983_vm15 = vcmp.eq.s32.totalorder %v385_v4, 1  ;;  %p724_p7 = pnand %p723_p6, %p855_p4 }
  0xbb   : > { %p729_p12 = por %p728_p11, %p727_p10 }
  0xbc   : > { %p725_p9 = pneg %p724_p7 }
  0xbe   : > { %p730_p13 = pnand %p729_p12, %p725_p9 }
  0xf7   : > { %v369_v6 = vpop.permute.xlu2 %368 }
  0xf8   : > { %vm377_vm1 = vcmp.eq.s32.totalorder %v369_v6, 1 }
  0xf9   : > { %vm381_vm2 = vmand %vm357_vm0, %vm377_vm1 }
  0xfa   : > { %vm388_vm3 = vmand %vm381_vm2, %vm983_vm15 }
  0xff   : > { %v375_v7 = vpop.permute.xlu2 %374 }
 0x100   : > { %vm379_vm6 = vcmp.eq.s32.totalorder %v375_v7, 1 }
 0x101   : > { %vm989_vm4 = vmand %vm359_vm5, %vm379_vm6 }
 0x102   : > { %vm390_vm7 = vmand %vm989_vm4, %vm983_vm15 }
 0x107   : > { %v366_v9 = vpop.permute.xlu1 %365 }
 0x108   : > { %vm376_vm9 = vcmp.eq.s32.totalorder %v366_v9, 1 }
 0x109   : > { %vm380_vm10 = vmand %vm356_vm8, %vm376_vm9 }
 0x10a   : > { %vm387_vm11 = vmand %vm380_vm10, %vm983_vm15 }
 0x10b   : > { %vm391_vm12 = vmpackc.low %vm388_vm3, %vm387_vm11 }
 0x10c   : > { %v393_v11 = vsel %vm391_vm12, 16711935, %v790_v0 }
 0x10f   : > { %v372_v10 = vpop.permute.xlu1 %371 }
 0x110   : > { %vm378_vm14 = vcmp.eq.s32.totalorder %v372_v10, 1 }
 0x111   : > { %vm382_vm0 = vmand %vm358_vm13, %vm378_vm14 }
 0x112   : > { %vm389_vm1 = vmand %vm382_vm0, %vm983_vm15 }
 0x113   : > { %vm392_vm2 = vmpackc.low %vm390_vm7, %vm389_vm1 }
 0x114   : > { %v394_v12 = vsel %vm392_vm2, 16711935, %v790_v0 }
 0x115   : > { %v395_v13 = vpack.c.b8 %v394_v12, %v393_v11 }
 0x117   : > { %vm396_vm3 = vnez %v395_v13 }
 0x118   : > { %v397_v14 = vsel %vm396_vm3, 16843009, %v790_v0 }
 0x119   : > { %398 = vst [vmem:[%s226_s15] sm:$0xff] %v397_v14 }
 0x11a   : > { %733 = shalt.err (!%p730_p13)
}
 0x11b   : > { %604 = dma.vmem_to_hbm [thread:$0]  (%p855_p4), %s429_s27, 128, %s431_s28, %s409_s29  }
 0x11c PF: > { %p615_p0 = scmp.ge.s32.totalorder %s788_s17, 2  ;;  %s462_s9 = sand.u32 1, %s768_s12  }
 0x11d   : > { %s463_s11 = scalar_lea.sflag [#allocation3], %s462_s9 }
 0x11e   : > { %p609_p1 = pnand %p615_p0, %p862_p8 }
 0x120   : > { %p610_p2 = pneg %p609_p1 }
 0x122   : > { %759 = dma.done.wait (%p610_p2), %s463_s11, 128  }
 0x123   : > { %761 = vsyncadd (%p610_p2), %s463_s11, 4294967168  ;;  %s473_s18 = scalar_lea.sflag [#allocation5], %s462_s9 }
 0x124   : > { %763 = dma.done.wait (%p610_p2), %s473_s18, 1024  }
 0x125   : > { %765 = vsyncadd (%p610_p2), %s473_s18, 4294966272  ;;  %s20_s17 = sadd.s32 1, %s788_s17   ;;  %s1067_s12 = smov %s772_s13 }
 0x126   : > { %p17_p3 = scmp.ge.s32.totalorder %s20_s17, 4   ;;  %s1068_s13 = smov %s776_s14 }
 0x127   : > { %s1069_s14 = smov %s868_s25  ;;  %s1070_s15 = smov %s784_s16 }
 0x128   : > { %s1071_s16 = smov %s1073_s20  ;;  %19 = sbr.rel (!%p17_p3) target bundleno = 6 (0x6), region = 84 }
 0x12d   :  { %479 = vsyncpa [#allocation3], 1 }
 0x12e   :  { %481 = vsyncpa [#allocation3 + $0x1], 1 }
 0x12f   :  { %482 = vsyncpa [#allocation5], 1 }
 0x130   :  { %484 = vsyncpa [#allocation5 + $0x1], 1 }

</bundles_post_ra>
